<compile_context>
chip_gen: v6e
topology: v6e:2x2x1
jax: 0.10.0
libtpu: 0.0.40
codegen_flags: <defaults>
</compile_context>

<pallas_src>
import math

import jax
import jax.numpy as jnp
from jax.experimental import pallas as pl
from jax.experimental.pallas import tpu as pltpu


def _round_up(x, m):
    return (x + m - 1) // m * m


def _pad2(a, rows, cols):
    r, c = a.shape
    return jnp.pad(a, ((0, rows - r), (0, cols - c)))


# ----------------------------------------------------------------------------
# Pallas kernel: both Q heads of the Critic for one batch tile.
# ----------------------------------------------------------------------------
def _critic_kernel(xu_ref,
                   w14_ref, b14_ref,
                   w2_ref, b2_ref, w5_ref, b5_ref,
                   w3_ref, b3_ref, w6_ref, b6_ref,
                   q_ref):
    xu = xu_ref[...]                         # (tm, Dp) bf16
    h1p = w2_ref.shape[0]                    # padded hidden-1 width (static)

    # Fused layer 1 for both heads: one wide (Dp, 2*H1) matmul.
    h = jnp.dot(xu, w14_ref[...], preferred_element_type=jnp.float32)
    h = jnp.maximum(h + b14_ref[...], 0.0).astype(jnp.bfloat16)
    h1 = h[:, :h1p]                          # Q1 head activations
    h2 = h[:, h1p:]                          # Q2 head activations

    # Layer 2 per head.
    a1 = jnp.dot(h1, w2_ref[...], preferred_element_type=jnp.float32)
    a1 = jnp.maximum(a1 + b2_ref[...], 0.0).astype(jnp.bfloat16)
    a2 = jnp.dot(h2, w5_ref[...], preferred_element_type=jnp.float32)
    a2 = jnp.maximum(a2 + b5_ref[...], 0.0).astype(jnp.bfloat16)

    # Layer 3 per head; concatenate into one lane-dense output slab.
    q1 = jnp.dot(a1, w3_ref[...], preferred_element_type=jnp.float32) + b3_ref[...]
    q2 = jnp.dot(a2, w6_ref[...], preferred_element_type=jnp.float32) + b6_ref[...]
    q_ref[...] = jnp.concatenate([q1, q2], axis=1)   # (tm, 2*NP) f32


# ----------------------------------------------------------------------------
# Parameter packing: pad to MXU-friendly shapes, cast weights to bf16,
# fuse the two heads' layer-1 weights/biases.  Call once, reuse every step.
# ----------------------------------------------------------------------------
def pack_critic_params(params):
    d_in, h1 = params["w1"].shape
    h2 = params["w2"].shape[1]
    n_actions = params["w3"].shape[1]
    Dp = _round_up(d_in, 128)
    H1 = _round_up(h1, 128)         # 400 -> 512
    H2 = _round_up(h2, 128)         # 300 -> 384
    NP = _round_up(n_actions, 128)  # n_actions -> 128

    def w(name, r, c):
        return _pad2(params[f"w{name}"], r, c).astype(jnp.bfloat16)

    def b(name, c):
        return _pad2(params[f"b{name}"], 1, c).astype(jnp.float32)

    return {
        "w14": jnp.concatenate([w("1", Dp, H1), w("4", Dp, H1)], axis=1),
        "b14": jnp.concatenate([b("1", H1), b("4", H1)], axis=1),
        "w2": w("2", H1, H2), "b2": b("2", H2),
        "w5": w("5", H1, H2), "b5": b("5", H2),
        "w3": w("3", H2, NP), "b3": b("3", NP),
        "w6": w("6", H2, NP), "b6": b("6", NP),
        "n_actions": n_actions,
        "d_in": d_in,
    }


# ----------------------------------------------------------------------------
# Forward wrapper (Critic.forward semantics).
# ----------------------------------------------------------------------------
def critic_forward(x, g, packed, u=None):
    """x: (B, state_dim), g: (B, goal_dim), optional u: (B,) action indices.

    Returns (q1, q2): (B, n_actions) each, or (B, 1) each if u is given.
    """
    # Flatten() embeddings + concat (glue, plain JAX).
    x = x.reshape(x.shape[0], -1)
    g = g.reshape(g.shape[0], -1)
    xu = jnp.concatenate([x, g], axis=1).astype(jnp.float32)
    B, d_in = xu.shape

    Dp = packed["w14"].shape[0]
    NP = packed["w3"].shape[1]
    n_actions = packed["n_actions"]

    # Batch tiling: pad rows to a sublane multiple, tile at most 512 rows/step
    # (biggest tile that comfortably fits VMEM alongside the resident weights).
    Bp = _round_up(max(B, 1), 8)
    tm = min(Bp, 512)
    Bp = _round_up(Bp, tm)
    xu_p = jnp.pad(xu.astype(jnp.bfloat16),
                   ((0, Bp - B), (0, Dp - d_in)))

    weights = (
        packed["w14"], packed["b14"],
        packed["w2"], packed["b2"], packed["w5"], packed["b5"],
        packed["w3"], packed["b3"], packed["w6"], packed["b6"],
    )

    def weight_spec(a):
        # Full-array block, VMEM-resident across all batch tiles.
        return pl.BlockSpec(a.shape, lambda i: (0, 0))

    q = pl.pallas_call(
        _critic_kernel,
        out_shape=jax.ShapeDtypeStruct((Bp, 2 * NP), jnp.float32),
        grid=(Bp // tm,),
        in_specs=[pl.BlockSpec((tm, Dp), lambda i: (i, 0))]
                 + [weight_spec(a) for a in weights],
        out_specs=pl.BlockSpec((tm, 2 * NP), lambda i: (i, 0)),
        compiler_params=pltpu.CompilerParams(
            dimension_semantics=("parallel",)),
    )(xu_p, *weights)

    q1 = q[:B, :n_actions]
    q2 = q[:B, NP:NP + n_actions]

    if u is not None:
        # masked_select: q[b, u[b]] -> (B, 1).  Cheap glue outside the kernel.
        # TODO(synk): could be folded into the kernel via scalar-prefetched u,
        # but the absolute win is negligible at these shapes.
        u = u.reshape(-1, 1).astype(jnp.int32)
        q1 = jnp.take_along_axis(q1, u, axis=1)
        q2 = jnp.take_along_axis(q2, u, axis=1)
    return q1, q2


# ----------------------------------------------------------------------------
# Deterministic parameter init (PyTorch nn.Linear default:
# U(-1/sqrt(fan_in), 1/sqrt(fan_in)) for weight and bias), stored (in, out).
# ----------------------------------------------------------------------------
def init_critic_params(key, state_dim, goal_dim, n_actions):
    d_in = state_dim + goal_dim
    sizes = {
        "1": (d_in, 400), "2": (400, 300), "3": (300, n_actions),
        "4": (d_in, 400), "5": (400, 300), "6": (300, n_actions),
    }
    params = {}
    keys = jax.random.split(key, 2 * len(sizes))
    for i, (name, (fin, fout)) in enumerate(sizes.items()):
        bound = 1.0 / math.sqrt(fin)
        params[f"w{name}"] = jax.random.uniform(
            keys[2 * i], (fin, fout), jnp.float32, -bound, bound)
        params[f"b{name}"] = jax.random.uniform(
            keys[2 * i + 1], (1, fout), jnp.float32, -bound, bound)
    return params


# ----------------------------------------------------------------------------
# Pure-JAX f32 reference for correctness sanity check.
# ----------------------------------------------------------------------------
def critic_forward_ref(x, g, params, u=None):
    xu = jnp.concatenate([x.reshape(x.shape[0], -1),
                          g.reshape(g.shape[0], -1)], axis=1)

    def head(a, b, c):
        h = jax.nn.relu(xu @ params[f"w{a}"] + params[f"b{a}"])
        h = jax.nn.relu(h @ params[f"w{b}"] + params[f"b{b}"])
        return h @ params[f"w{c}"] + params[f"b{c}"]

    q1, q2 = head("1", "2", "3"), head("4", "5", "6")
    if u is not None:
        u = u.reshape(-1, 1).astype(jnp.int32)
        q1 = jnp.take_along_axis(q1, u, axis=1)
        q2 = jnp.take_along_axis(q2, u, axis=1)
    return q1, q2


if __name__ == "__main__":
    state_dim, goal_dim, n_actions = 16, 8, 6
    batch = 2

    key = jax.random.PRNGKey(0)
    kx, kg, ku, kp = jax.random.split(key, 4)

    x = jax.random.normal(kx, (batch, state_dim), jnp.float32)
    g = jax.random.normal(kg, (batch, goal_dim), jnp.float32)
    u = jax.random.randint(ku, (batch,), 0, n_actions, jnp.int32)
    params = init_critic_params(kp, state_dim, goal_dim, n_actions)
    packed = pack_critic_params(params)

    # full q-values
    q1, q2 = critic_forward(x, g, packed)
    q1, q2 = jax.block_until_ready(q1), jax.block_until_ready(q2)

    # masked (u given) path
    q1m, q2m = critic_forward(x, g, packed, u)
    q1m, q2m = jax.block_until_ready(q1m), jax.block_until_ready(q2m)

    # verify against pure-JAX f32 reference (bf16 matmul -> loosened tolerance)
    r1, r2 = critic_forward_ref(x, g, params)
    r1m, r2m = critic_forward_ref(x, g, params, u)
    assert q1.shape == (batch, n_actions) and q2.shape == (batch, n_actions)
    assert q1m.shape == (batch, 1) and q2m.shape == (batch, 1)
    assert jnp.allclose(q1, r1, atol=5e-2, rtol=5e-2)
    assert jnp.allclose(q2, r2, atol=5e-2, rtol=5e-2)
    assert jnp.allclose(q1m, r1m, atol=5e-2, rtol=5e-2)
    assert jnp.allclose(q2m, r2m, atol=5e-2, rtol=5e-2)

    print("KERNEL_OK")
</pallas_src>

<mosaic_0001>
module attributes {stable_mosaic.version = 11 : i64} {
  func.func @_critic_kernel(%arg0: i32, %arg1: memref<8x128xbf16, #tpu.memory_space<vmem>>, %arg2: memref<128x1024xbf16, #tpu.memory_space<vmem>>, %arg3: memref<1x1024xf32, #tpu.memory_space<vmem>>, %arg4: memref<512x384xbf16, #tpu.memory_space<vmem>>, %arg5: memref<1x384xf32, #tpu.memory_space<vmem>>, %arg6: memref<512x384xbf16, #tpu.memory_space<vmem>>, %arg7: memref<1x384xf32, #tpu.memory_space<vmem>>, %arg8: memref<384x128xbf16, #tpu.memory_space<vmem>>, %arg9: memref<1x128xf32, #tpu.memory_space<vmem>>, %arg10: memref<384x128xbf16, #tpu.memory_space<vmem>>, %arg11: memref<1x128xf32, #tpu.memory_space<vmem>>, %arg12: memref<8x256xf32, #tpu.memory_space<vmem>>) attributes {dimension_semantics = [#tpu.dimension_semantics<parallel>], iteration_bounds = array<i64: 1>, scalar_prefetch = 0 : i64, scratch_operands = 0 : i64, tpu.core_type = #tpu.core_type<tc>, window_params = [{transform_indices = @transform_0, window_bounds = array<i64: 8, 128>}, {pipeline_mode = #tpu.pipeline_mode<synchronous>, transform_indices = @transform_1, window_bounds = array<i64: 128, 1024>}, {pipeline_mode = #tpu.pipeline_mode<synchronous>, transform_indices = @transform_2, window_bounds = array<i64: 1, 1024>}, {pipeline_mode = #tpu.pipeline_mode<synchronous>, transform_indices = @transform_3, window_bounds = array<i64: 512, 384>}, {pipeline_mode = #tpu.pipeline_mode<synchronous>, transform_indices = @transform_4, window_bounds = array<i64: 1, 384>}, {pipeline_mode = #tpu.pipeline_mode<synchronous>, transform_indices = @transform_5, window_bounds = array<i64: 512, 384>}, {pipeline_mode = #tpu.pipeline_mode<synchronous>, transform_indices = @transform_6, window_bounds = array<i64: 1, 384>}, {pipeline_mode = #tpu.pipeline_mode<synchronous>, transform_indices = @transform_7, window_bounds = array<i64: 384, 128>}, {pipeline_mode = #tpu.pipeline_mode<synchronous>, transform_indices = @transform_8, window_bounds = array<i64: 1, 128>}, {pipeline_mode = #tpu.pipeline_mode<synchronous>, transform_indices = @transform_9, window_bounds = array<i64: 384, 128>}, {pipeline_mode = #tpu.pipeline_mode<synchronous>, transform_indices = @transform_10, window_bounds = array<i64: 1, 128>}, {transform_indices = @transform_11, window_bounds = array<i64: 8, 256>}]} {
    %c0 = arith.constant 0 : index
    %c0_0 = arith.constant 0 : index
    %0 = vector.load %arg1[%c0, %c0_0] : memref<8x128xbf16, #tpu.memory_space<vmem>>, vector<8x128xbf16>
    %c0_1 = arith.constant 0 : index
    %c0_2 = arith.constant 0 : index
    %1 = vector.load %arg2[%c0_1, %c0_2] : memref<128x1024xbf16, #tpu.memory_space<vmem>>, vector<128x1024xbf16>
    %cst = arith.constant dense<0.000000e+00> : vector<8x1024xf32>
    %2 = tpu.matmul %0, %1, %cst {dimension_numbers = #tpu.dot_dimension_numbers<[1], [0], [0], [1], [0, 0, 1, 1], [], []>} : vector<8x128xbf16>, vector<128x1024xbf16>, vector<8x1024xf32> -> vector<8x1024xf32>
    %c0_3 = arith.constant 0 : index
    %c0_4 = arith.constant 0 : index
    %3 = vector.load %arg3[%c0_3, %c0_4] : memref<1x1024xf32, #tpu.memory_space<vmem>>, vector<1x1024xf32>
    %4 = vector.broadcast %3 : vector<1x1024xf32> to vector<8x1024xf32>
    %5 = arith.addf %2, %4 : vector<8x1024xf32>
    %cst_5 = arith.constant 0.000000e+00 : f32
    %6 = vector.broadcast %cst_5 : f32 to vector<8x1024xf32>
    %7 = arith.maximumf %5, %6 : vector<8x1024xf32>
    %8 = arith.truncf %7 : vector<8x1024xf32> to vector<8x1024xbf16>
    %9 = vector.extract_strided_slice %8 {offsets = [0, 0], sizes = [8, 512], strides = [1, 1]} : vector<8x1024xbf16> to vector<8x512xbf16>
    %10 = vector.extract_strided_slice %8 {offsets = [0, 512], sizes = [8, 512], strides = [1, 1]} : vector<8x1024xbf16> to vector<8x512xbf16>
    %c0_6 = arith.constant 0 : index
    %c0_7 = arith.constant 0 : index
    %11 = vector.load %arg4[%c0_6, %c0_7] : memref<512x384xbf16, #tpu.memory_space<vmem>>, vector<512x384xbf16>
    %cst_8 = arith.constant dense<0.000000e+00> : vector<8x384xf32>
    %12 = tpu.matmul %9, %11, %cst_8 {dimension_numbers = #tpu.dot_dimension_numbers<[1], [0], [0], [1], [0, 0, 1, 1], [], []>} : vector<8x512xbf16>, vector<512x384xbf16>, vector<8x384xf32> -> vector<8x384xf32>
    %c0_9 = arith.constant 0 : index
    %c0_10 = arith.constant 0 : index
    %13 = vector.load %arg5[%c0_9, %c0_10] : memref<1x384xf32, #tpu.memory_space<vmem>>, vector<1x384xf32>
    %14 = vector.broadcast %13 : vector<1x384xf32> to vector<8x384xf32>
    %15 = arith.addf %12, %14 : vector<8x384xf32>
    %cst_11 = arith.constant 0.000000e+00 : f32
    %16 = vector.broadcast %cst_11 : f32 to vector<8x384xf32>
    %17 = arith.maximumf %15, %16 : vector<8x384xf32>
    %18 = arith.truncf %17 : vector<8x384xf32> to vector<8x384xbf16>
    %c0_12 = arith.constant 0 : index
    %c0_13 = arith.constant 0 : index
    %19 = vector.load %arg6[%c0_12, %c0_13] : memref<512x384xbf16, #tpu.memory_space<vmem>>, vector<512x384xbf16>
    %cst_14 = arith.constant dense<0.000000e+00> : vector<8x384xf32>
    %20 = tpu.matmul %10, %19, %cst_14 {dimension_numbers = #tpu.dot_dimension_numbers<[1], [0], [0], [1], [0, 0, 1, 1], [], []>} : vector<8x512xbf16>, vector<512x384xbf16>, vector<8x384xf32> -> vector<8x384xf32>
    %c0_15 = arith.constant 0 : index
    %c0_16 = arith.constant 0 : index
    %21 = vector.load %arg7[%c0_15, %c0_16] : memref<1x384xf32, #tpu.memory_space<vmem>>, vector<1x384xf32>
    %22 = vector.broadcast %21 : vector<1x384xf32> to vector<8x384xf32>
    %23 = arith.addf %20, %22 : vector<8x384xf32>
    %cst_17 = arith.constant 0.000000e+00 : f32
    %24 = vector.broadcast %cst_17 : f32 to vector<8x384xf32>
    %25 = arith.maximumf %23, %24 : vector<8x384xf32>
    %26 = arith.truncf %25 : vector<8x384xf32> to vector<8x384xbf16>
    %c0_18 = arith.constant 0 : index
    %c0_19 = arith.constant 0 : index
    %27 = vector.load %arg8[%c0_18, %c0_19] : memref<384x128xbf16, #tpu.memory_space<vmem>>, vector<384x128xbf16>
    %cst_20 = arith.constant dense<0.000000e+00> : vector<8x128xf32>
    %28 = tpu.matmul %18, %27, %cst_20 {dimension_numbers = #tpu.dot_dimension_numbers<[1], [0], [0], [1], [0, 0, 1, 1], [], []>} : vector<8x384xbf16>, vector<384x128xbf16>, vector<8x128xf32> -> vector<8x128xf32>
    %c0_21 = arith.constant 0 : index
    %c0_22 = arith.constant 0 : index
    %29 = vector.load %arg9[%c0_21, %c0_22] : memref<1x128xf32, #tpu.memory_space<vmem>>, vector<1x128xf32>
    %30 = vector.broadcast %29 : vector<1x128xf32> to vector<8x128xf32>
    %31 = arith.addf %28, %30 : vector<8x128xf32>
    %c0_23 = arith.constant 0 : index
    %c0_24 = arith.constant 0 : index
    %32 = vector.load %arg10[%c0_23, %c0_24] : memref<384x128xbf16, #tpu.memory_space<vmem>>, vector<384x128xbf16>
    %cst_25 = arith.constant dense<0.000000e+00> : vector<8x128xf32>
    %33 = tpu.matmul %26, %32, %cst_25 {dimension_numbers = #tpu.dot_dimension_numbers<[1], [0], [0], [1], [0, 0, 1, 1], [], []>} : vector<8x384xbf16>, vector<384x128xbf16>, vector<8x128xf32> -> vector<8x128xf32>
    %c0_26 = arith.constant 0 : index
    %c0_27 = arith.constant 0 : index
    %34 = vector.load %arg11[%c0_26, %c0_27] : memref<1x128xf32, #tpu.memory_space<vmem>>, vector<1x128xf32>
    %35 = vector.broadcast %34 : vector<1x128xf32> to vector<8x128xf32>
    %36 = arith.addf %33, %35 : vector<8x128xf32>
    %37 = tpu.concatenate %31, %36 in 1 : vector<8x128xf32>, vector<8x128xf32> -> vector<8x256xf32>
    %c0_28 = arith.constant 0 : index
    %c0_29 = arith.constant 0 : index
    %38 = vector.load %arg12[%c0_28, %c0_29] : memref<8x256xf32, #tpu.memory_space<vmem>>, vector<8x256xf32>
    tpu.vector_store %arg12[%c0_28, %c0_29], %37 {strides = array<i32>} : memref<8x256xf32, #tpu.memory_space<vmem>>, vector<8x256xf32>,
    return
  }
  func.func @transform_0(%arg0: i32) -> (i32, i32) {
    %c0_i32 = arith.constant 0 : i32
    %c0_i32_0 = arith.constant 0 : i32
    return %arg0, %c0_i32 : i32, i32
  }
  func.func @transform_1(%arg0: i32) -> (i32, i32) {
    %c0_i32 = arith.constant 0 : i32
    %c0_i32_0 = arith.constant 0 : i32
    %c0_i32_1 = arith.constant 0 : i32
    return %c0_i32, %c0_i32_0 : i32, i32
  }
  func.func @transform_2(%arg0: i32) -> (i32, i32) {
    %c0_i32 = arith.constant 0 : i32
    %c0_i32_0 = arith.constant 0 : i32
    %c0_i32_1 = arith.constant 0 : i32
    return %c0_i32, %c0_i32_0 : i32, i32
  }
  func.func @transform_3(%arg0: i32) -> (i32, i32) {
    %c0_i32 = arith.constant 0 : i32
    %c0_i32_0 = arith.constant 0 : i32
    %c0_i32_1 = arith.constant 0 : i32
    return %c0_i32, %c0_i32_0 : i32, i32
  }
  func.func @transform_4(%arg0: i32) -> (i32, i32) {
    %c0_i32 = arith.constant 0 : i32
    %c0_i32_0 = arith.constant 0 : i32
    %c0_i32_1 = arith.constant 0 : i32
    return %c0_i32, %c0_i32_0 : i32, i32
  }
  func.func @transform_5(%arg0: i32) -> (i32, i32) {
    %c0_i32 = arith.constant 0 : i32
    %c0_i32_0 = arith.constant 0 : i32
    %c0_i32_1 = arith.constant 0 : i32
    return %c0_i32, %c0_i32_0 : i32, i32
  }
  func.func @transform_6(%arg0: i32) -> (i32, i32) {
    %c0_i32 = arith.constant 0 : i32
    %c0_i32_0 = arith.constant 0 : i32
    %c0_i32_1 = arith.constant 0 : i32
    return %c0_i32, %c0_i32_0 : i32, i32
  }
  func.func @transform_7(%arg0: i32) -> (i32, i32) {
    %c0_i32 = arith.constant 0 : i32
    %c0_i32_0 = arith.constant 0 : i32
    %c0_i32_1 = arith.constant 0 : i32
    return %c0_i32, %c0_i32_0 : i32, i32
  }
  func.func @transform_8(%arg0: i32) -> (i32, i32) {
    %c0_i32 = arith.constant 0 : i32
    %c0_i32_0 = arith.constant 0 : i32
    %c0_i32_1 = arith.constant 0 : i32
    return %c0_i32, %c0_i32_0 : i32, i32
  }
  func.func @transform_9(%arg0: i32) -> (i32, i32) {
    %c0_i32 = arith.constant 0 : i32
    %c0_i32_0 = arith.constant 0 : i32
    %c0_i32_1 = arith.constant 0 : i32
    return %c0_i32, %c0_i32_0 : i32, i32
  }
  func.func @transform_10(%arg0: i32) -> (i32, i32) {
    %c0_i32 = arith.constant 0 : i32
    %c0_i32_0 = arith.constant 0 : i32
    %c0_i32_1 = arith.constant 0 : i32
    return %c0_i32, %c0_i32_0 : i32, i32
  }
  func.func @transform_11(%arg0: i32) -> (i32, i32) {
    %c0_i32 = arith.constant 0 : i32
    %c0_i32_0 = arith.constant 0 : i32
    return %arg0, %c0_i32 : i32, i32
  }
}

</mosaic_0001>

<bundles_post_ra>
// kernel: tpu_custom_call.1
= control target key start
LH: loop header
LB: loop body
LE: loop exit
PB: predicated region body
PF: predicated region fallthrough
CT: control target
= control target key end

     0   :  { %16 = vsyncpa [#allocation3], 0  ;;  %s4173_s0 = inlined_call_operand.hbm [shape: bf16[8,128], index: 0, kind: input, shape index: {}]   ;;  %s4174_s1 = inlined_call_operand.hbm [shape: bf16[128,1024], index: 1, kind: input, shape index: {}]   ;;  %s4175_s2 = inlined_call_operand.hbm [shape: f32[1,1024], index: 2, kind: input, shape index: {}]   ;;  %s4176_s3 = inlined_call_operand.hbm [shape: bf16[512,384], index: 3, kind: input, shape index: {}]   ;;  %s4177_s4 = inlined_call_operand.vmem [shape: f32[1,384], index: 4, kind: input, shape index: {}]   ;;  %s4178_s5 = inlined_call_operand.hbm [shape: bf16[512,384], index: 5, kind: input, shape index: {}]   ;;  %s4179_s6 = inlined_call_operand.vmem [shape: f32[1,384], index: 6, kind: input, shape index: {}]   ;;  %s4180_s7 = inlined_call_operand.hbm [shape: bf16[384,128], index: 7, kind: input, shape index: {}]   ;;  %s4181_s8 = inlined_call_operand.vmem [shape: f32[1,128], index: 8, kind: input, shape index: {}]   ;;  %s4182_s9 = inlined_call_operand.hbm [shape: bf16[384,128], index: 9, kind: input, shape index: {}]   ;;  %s4183_s10 = inlined_call_operand.vmem [shape: f32[1,128], index: 10, kind: input, shape index: {}]   ;;  %s4184_s11 = inlined_call_operand.hbm [shape: f32[8,256], index: 11, kind: output, shape index: {}]  }
   0x1   :  { %17 = vsyncpa [#allocation6], 0 }
   0x2   :  { %18 = vsyncpa [#allocation9], 0 }
   0x3   :  { %19 = vsyncpa [#allocation12], 0 }
   0x4   :  { %20 = vsyncpa [#allocation4], 0  ;;  %s3953_s17 = smov [#allocation5]  }
   0x5   :  { %s36_s18 = sshll.u32 %s3953_s17, 4  ;;  %s37_s18 = int_to_ptr.vmem [resolvable:$true] %s36_s18 }
   0x6   :  { %s3791_s19 = scalar_lea.vmem %s37_s18, 8192  ;;  %p3796_p1 = scmp.lt.s32.totalorder %s37_s18, %s37_s18 }
   0x7   :  { %p3792_p0 = scmp.ne.s32.totalorder %s37_s18, %s3791_s19  ;;  %p3797_p2 = scmp.lt.s32.totalorder %s3791_s19, %s3791_s19 }
   0x9   :  { %p3798_p3 = por %p3797_p2, %p3796_p1 }
   0xb   :  { %p3799_p4 = pnand %p3798_p3, %p3792_p0 }
   0xd   :  { %3802 = shalt.err (!%p3799_p4)
}
   0xe   :  { %s3954_s20 = smov 512   ;;  %s3955_s21 = smov 32  }
   0xf   :  { %42 = dma.hbm_to_vmem [thread:$0]  %s4174_s1, 8192, %s37_s18, [#allocation6], %s3954_s20, %s3954_s20, %s3955_s21  }
  0x10   :  { %s3956_s24 = smov [#allocation8]  }
  0x11   :  { %s58_s25 = sshll.u32 %s3956_s24, 4  ;;  %s59_s25 = int_to_ptr.vmem [resolvable:$true] %s58_s25 }
  0x12   :  { %s3811_s26 = scalar_lea.vmem %s59_s25, 12288  ;;  %p3816_p6 = scmp.lt.s32.totalorder %s59_s25, %s59_s25 }
  0x13   :  { %p3812_p5 = scmp.ne.s32.totalorder %s59_s25, %s3811_s26  ;;  %p3817_p7 = scmp.lt.s32.totalorder %s3811_s26, %s3811_s26 }
  0x15   :  { %p3818_p8 = por %p3817_p7, %p3816_p6 }
  0x17   :  { %p3819_p9 = pnand %p3818_p8, %p3812_p5 }
  0x19   :  { %3822 = shalt.err (!%p3819_p9)
}
  0x1a   :  { %s3957_s27 = smov 192   ;;  %s3958_s28 = smov 12  }
  0x1b   :  { %64 = dma.hbm_to_vmem [thread:$0]  %s4176_s3, 12288, %s59_s25, [#allocation9], %s3957_s27, %s3957_s27, %s3958_s28  }
  0x1c   :  { %s3959_s1 = smov [#allocation11]  }
  0x1d   :  { %s86_s12 = sshll.u32 %s3959_s1, 4  ;;  %s87_s12 = int_to_ptr.vmem [resolvable:$true] %s86_s12 }
  0x1e   :  { %s3831_s13 = scalar_lea.vmem %s87_s12, 3072  ;;  %p3836_p11 = scmp.lt.s32.totalorder %s87_s12, %s87_s12 }
  0x1f   :  { %p3832_p10 = scmp.ne.s32.totalorder %s87_s12, %s3831_s13  ;;  %p3837_p12 = scmp.lt.s32.totalorder %s3831_s13, %s3831_s13 }
  0x21   :  { %p3838_p13 = por %p3837_p12, %p3836_p11 }
  0x23   :  { %p3839_p0 = pnand %p3838_p13, %p3832_p10 }
  0x25   :  { %3842 = shalt.err (!%p3839_p0)
}
  0x26   :  { %s3960_s14 = smov 64   ;;  %s3961_s15 = smov 4  }
  0x27   :  { %92 = dma.hbm_to_vmem [thread:$0]  %s4180_s7, 3072, %s87_s12, [#allocation12], %s3960_s14, %s3960_s14, %s3961_s15  }
  0x28   :  { %s3962_s3 = smov [#allocation2]   ;;  %s3963_s19 = smov [#allocation7]  }
  0x29   :  { %s27_s18 = sshll.u32 %s3962_s3, 4  ;;  %s49_s20 = sshll.u32 %s3963_s19, 4  ;;  %s28_s18 = int_to_ptr.vmem [resolvable:$true] %s27_s18  ;;  %s50_s20 = int_to_ptr.vmem [resolvable:$true] %s49_s20 }
  0x2a   :  { %s3851_s21 = scalar_lea.vmem %s28_s18, 64  ;;  %p3856_p2 = scmp.lt.s32.totalorder %s28_s18, %s28_s18 }
  0x2b   :  { %p3852_p1 = scmp.ne.s32.totalorder %s28_s18, %s3851_s21  ;;  %p3857_p3 = scmp.lt.s32.totalorder %s3851_s21, %s3851_s21 }
  0x2d   :  { %p3858_p4 = por %p3857_p3, %p3856_p2 }
  0x2f   :  { %p3859_p5 = pnand %p3858_p4, %p3852_p1 }
  0x31   :  { %3862 = shalt.err (!%p3859_p5)
}
  0x32   :  { %30 = dma.hbm_to_vmem [thread:$0]  %s4173_s0, 64, %s28_s18, [#allocation3]  }
  0x33   :  { %s3871_s24 = scalar_lea.vmem %s50_s20, 128  ;;  %p3876_p7 = scmp.lt.s32.totalorder %s50_s20, %s50_s20 }
  0x34   :  { %p3872_p6 = scmp.ne.s32.totalorder %s50_s20, %s3871_s24  ;;  %p3877_p8 = scmp.lt.s32.totalorder %s3871_s24, %s3871_s24 }
  0x36   :  { %p3878_p9 = por %p3877_p8, %p3876_p7 }
  0x38   :  { %p3879_p10 = pnand %p3878_p9, %p3872_p6 }
  0x3a   :  { %3882 = shalt.err (!%p3879_p10)
}
  0x3b   :  { %52 = dma.hbm_to_vmem [thread:$0]  %s4175_s2, 128, %s50_s20, [#allocation6]  }
  0x3c   :  { %s3964_s26 = smov [#allocation10]   ;;  %s3965_s30 = smov [#allocation13]  }
  0x3d   :  { %s72_s29 = sshll.u32 %s3964_s26, 4  ;;  %s100_s1 = sshll.u32 %s3965_s30, 4  ;;  %s73_s29 = int_to_ptr.vmem [resolvable:$true] %s72_s29  ;;  %s101_s1 = int_to_ptr.vmem [resolvable:$true] %s100_s1 }
  0x3e   :  { %s3891_s12 = scalar_lea.vmem %s73_s29, 12288  ;;  %p3896_p12 = scmp.lt.s32.totalorder %s73_s29, %s73_s29 }
  0x3f   :  { %p3892_p11 = scmp.ne.s32.totalorder %s73_s29, %s3891_s12  ;;  %p3897_p13 = scmp.lt.s32.totalorder %s3891_s12, %s3891_s12 }
  0x41   :  { %p3898_p0 = por %p3897_p13, %p3896_p12 }
  0x43   :  { %p3899_p1 = pnand %p3898_p0, %p3892_p11 }
  0x45   :  { %3902 = shalt.err (!%p3899_p1)
}
  0x46   :  { %78 = dma.hbm_to_vmem [thread:$0]  %s4178_s5, 12288, %s73_s29, [#allocation9], %s3957_s27, %s3957_s27, %s3958_s28  }
  0x47   :  { %s3911_s2 = scalar_lea.vmem %s101_s1, 3072  ;;  %p3916_p3 = scmp.lt.s32.totalorder %s101_s1, %s101_s1 }
  0x48   :  { %p3912_p2 = scmp.ne.s32.totalorder %s101_s1, %s3911_s2  ;;  %p3917_p4 = scmp.lt.s32.totalorder %s3911_s2, %s3911_s2 }
  0x4a   :  { %p3918_p5 = por %p3917_p4, %p3916_p3 }
  0x4c   :  { %p3919_p6 = pnand %p3918_p5, %p3912_p2 }
  0x4e   :  { %3922 = shalt.err (!%p3919_p6)
}
  0x4f   :  { %106 = dma.hbm_to_vmem [thread:$0]  %s4182_s9, 3072, %s101_s1, [#allocation12], %s3960_s14, %s3960_s14, %s3961_s15  }
  0x50   :  { %3943 = dma.done.wait [#allocation3], 64  }
  0x51   :  { %3944 = vsyncadd [#allocation3], 4294967232 }
  0x52   :  { %3945 = dma.done.wait [#allocation6], 8320  }
  0x53   :  { %3946 = vsyncadd [#allocation6], 4294958976 }
  0x54   :  { %3947 = dma.done.wait [#allocation9], 24576  }
  0x55   :  { %3948 = vsyncadd [#allocation9], 4294942720 }
  0x56   :  { %3949 = dma.done.wait [#allocation12], 6144  }
  0x57   :  { %3950 = vsyncadd [#allocation12], 4294961152  ;;  %v3966_v0 = vmov 0   ;;  %v188_v1 = vld [vmem:[#allocation5 + $0x1c0] sm:$0xff]  ;;  %v189_v3 = vld [vmem:[#allocation5 + $0x1c8] sm:$0xff]  ;;  %vm3968_vm0 = vmmov 0  }
  0x58   :  { %590 = vmatprep.mubr.bf16.mxu0 %v3966_v0  ;;  %631 = vmatprep.mubr.bf16.mxu1 %v3966_v0  ;;  %v192_v2 = vld [vmem:[#allocation5 + $0x1e0] sm:$0xff]  ;;  %v193_v5 = vld [vmem:[#allocation5 + $0x1e8] sm:$0xff]  ;;  %v190_v62 = vld [vmem:[#allocation5 + $0x1d0] sm:$0xff]  ;;  %s3969_s3 = smov [#allocation14]  }
  0x59   :  { %v3023_v4 = vcombine.high %v188_v1, %v192_v2  ;;  %v3022_v6 = vcombine.low %v188_v1, %v192_v2  ;;  %v180_v7 = vld [vmem:[#allocation5 + $0x180] sm:$0xff]  ;;  %v3025_v9 = vcombine.high %v189_v3, %v193_v5  ;;  %v3024_v10 = vcombine.low %v189_v3, %v193_v5  ;;  %v181_v12 = vld [vmem:[#allocation5 + $0x188] sm:$0xff]  ;;  %v194_v1 = vld [vmem:[#allocation5 + $0x1f0] sm:$0xff]  ;;  %s2954_s18 = sshll.u32 %s3969_s3, 4  ;;  %s2955_s18 = int_to_ptr.vmem [resolvable:$true] %s2954_s18 }
  0x5a   :  { %v184_v8 = vld [vmem:[#allocation5 + $0x1a0] sm:$0xff]  ;;  %v185_v13 = vld [vmem:[#allocation5 + $0x1a8] sm:$0xff]  ;;  %v191_v2 = vld [vmem:[#allocation5 + $0x1d8] sm:$0xff]  ;;  %p3928_p8 = scmp.lt.s32.totalorder %s2955_s18, %s2955_s18 }
  0x5b   :  { %v3015_v11 = vcombine.high %v180_v7, %v184_v8  ;;  %v172_v14 = vld [vmem:[#allocation5 + $0x140] sm:$0xff]  ;;  %558 = vmatprep.subr.bf16.mxu0 %v3023_v4  ;;  %v3017_v15 = vcombine.high %v181_v12, %v185_v13  ;;  %v173_v17 = vld [vmem:[#allocation5 + $0x148] sm:$0xff]  ;;  %599 = vmatprep.subr.bf16.mxu1 %v3025_v9  ;;  %v3014_v19 = vcombine.low %v180_v7, %v184_v8  ;;  %v195_v3 = vld [vmem:[#allocation5 + $0x1f8] sm:$0xff] }
  0x5c   :  { %v176_v16 = vld [vmem:[#allocation5 + $0x160] sm:$0xff]  ;;  %v177_v18 = vld [vmem:[#allocation5 + $0x168] sm:$0xff]  ;;  %559 = vmatpush1.bf16.msra.mxu0 %v3022_v6  ;;  %600 = vmatpush1.bf16.msra.mxu1 %v3024_v10  ;;  %v3016_v20 = vcombine.low %v181_v12, %v185_v13  ;;  %v3027_v6 = vcombine.high %v190_v62, %v194_v1  ;;  %v182_v7 = vld [vmem:[#allocation5 + $0x190] sm:$0xff]  ;;  %v3029_v8 = vcombine.high %v191_v2, %v195_v3 }
  0x5d   :  { %560 = vmatprep.subr.bf16.mxu0 %v3015_v11  ;;  %v3007_v21 = vcombine.high %v172_v14, %v176_v16  ;;  %601 = vmatprep.subr.bf16.mxu1 %v3017_v15  ;;  %v3009_v22 = vcombine.high %v173_v17, %v177_v18  ;;  %v164_v23 = vld [vmem:[#allocation5 + $0x100] sm:$0xff]  ;;  %v165_v25 = vld [vmem:[#allocation5 + $0x108] sm:$0xff]  ;;  %v3006_v27 = vcombine.low %v172_v14, %v176_v16  ;;  %v186_v9 = vld [vmem:[#allocation5 + $0x1b0] sm:$0xff] }
  0x5e   :  { %v168_v24 = vld [vmem:[#allocation5 + $0x120] sm:$0xff]  ;;  %v169_v26 = vld [vmem:[#allocation5 + $0x128] sm:$0xff]  ;;  %v3008_v28 = vcombine.low %v173_v17, %v177_v18  ;;  %v183_v10 = vld [vmem:[#allocation5 + $0x198] sm:$0xff]  ;;  %v3026_v13 = vcombine.low %v190_v62, %v194_v1  ;;  %v3028_v14 = vcombine.low %v191_v2, %v195_v3  ;;  %v3019_v15 = vcombine.high %v182_v7, %v186_v9 }
  0x5f   :  { %v2999_v29 = vcombine.high %v164_v23, %v168_v24  ;;  %v3001_v30 = vcombine.high %v165_v25, %v169_v26  ;;  %v156_v31 = vld [vmem:[#allocation5 + $0xc0] sm:$0xff]  ;;  %v157_v33 = vld [vmem:[#allocation5 + $0xc8] sm:$0xff]  ;;  %v2998_v35 = vcombine.low %v164_v23, %v168_v24  ;;  %v3000_v36 = vcombine.low %v165_v25, %v169_v26  ;;  %v187_v11 = vld [vmem:[#allocation5 + $0x1b8] sm:$0xff] }
  0x60   :  { %561 = vmatpush1.bf16.msra.mxu0 %v3014_v19  ;;  %602 = vmatpush1.bf16.msra.mxu1 %v3016_v20  ;;  %v160_v32 = vld [vmem:[#allocation5 + $0xe0] sm:$0xff]  ;;  %v161_v34 = vld [vmem:[#allocation5 + $0xe8] sm:$0xff]  ;;  %v4065_v12 = vld [vmem:[#allocation2] sm:$0xf]  ;;  %v3021_v17 = vcombine.high %v183_v10, %v187_v11 }
  0x61   :  { %562 = vmatprep.subr.bf16.mxu0 %v3007_v21  ;;  %603 = vmatprep.subr.bf16.mxu1 %v3009_v22  ;;  %v2991_v37 = vcombine.high %v156_v31, %v160_v32  ;;  %v2993_v38 = vcombine.high %v157_v33, %v161_v34  ;;  %v148_v39 = vld [vmem:[#allocation5 + $0x80] sm:$0xff]  ;;  %v149_v41 = vld [vmem:[#allocation5 + $0x88] sm:$0xff]  ;;  %v2990_v43 = vcombine.low %v156_v31, %v160_v32  ;;  %v174_v16 = vld [vmem:[#allocation5 + $0x150] sm:$0xff] }
  0x62   :  { %v152_v40 = vld [vmem:[#allocation5 + $0xa0] sm:$0xff]  ;;  %v153_v42 = vld [vmem:[#allocation5 + $0xa8] sm:$0xff]  ;;  %v2992_v44 = vcombine.low %v157_v33, %v161_v34  ;;  %v178_v18 = vld [vmem:[#allocation5 + $0x170] sm:$0xff]  ;;  %v3018_v21 = vcombine.low %v182_v7, %v186_v9  ;;  %v3020_v22 = vcombine.low %v183_v10, %v187_v11 }
  0x63   :  { %v2983_v45 = vcombine.high %v148_v39, %v152_v40  ;;  %v2985_v46 = vcombine.high %v149_v41, %v153_v42  ;;  %v140_v47 = vld [vmem:[#allocation5 + $0x40] sm:$0xff]  ;;  %v141_v49 = vld [vmem:[#allocation5 + $0x48] sm:$0xff]  ;;  %v2982_v51 = vcombine.low %v148_v39, %v152_v40  ;;  %v2984_v52 = vcombine.low %v149_v41, %v153_v42  ;;  %v175_v19 = vld [vmem:[#allocation5 + $0x158] sm:$0xff] }
  0x64   :  { %563 = vmatpush1.bf16.msra.mxu0 %v3006_v27  ;;  %604 = vmatpush1.bf16.msra.mxu1 %v3008_v28  ;;  %v144_v48 = vld [vmem:[#allocation5 + $0x60] sm:$0xff]  ;;  %v145_v50 = vld [vmem:[#allocation5 + $0x68] sm:$0xff]  ;;  %v179_v20 = vld [vmem:[#allocation5 + $0x178] sm:$0xff]  ;;  %v3011_v23 = vcombine.high %v174_v16, %v178_v18 }
  0x65   :  { %564 = vmatprep.subr.bf16.mxu0 %v2999_v29  ;;  %605 = vmatprep.subr.bf16.mxu1 %v3001_v30  ;;  %v2975_v53 = vcombine.high %v140_v47, %v144_v48  ;;  %v132_v54 = vld [vmem:[#allocation5] sm:$0xff]  ;;  %v2977_v55 = vcombine.high %v141_v49, %v145_v50  ;;  %v133_v57 = vld [vmem:[#allocation5 + $0x8] sm:$0xff]  ;;  %v2974_v59 = vcombine.low %v140_v47, %v144_v48  ;;  %v166_v24 = vld [vmem:[#allocation5 + $0x110] sm:$0xff] }
  0x66   :  { %v136_v56 = vld [vmem:[#allocation5 + $0x20] sm:$0xff]  ;;  %v137_v58 = vld [vmem:[#allocation5 + $0x28] sm:$0xff]  ;;  %v2976_v60 = vcombine.low %v141_v49, %v145_v50  ;;  %v3013_v25 = vcombine.high %v175_v19, %v179_v20  ;;  %v170_v26 = vld [vmem:[#allocation5 + $0x130] sm:$0xff]  ;;  %v3010_v29 = vcombine.low %v174_v16, %v178_v18  ;;  %v3012_v30 = vcombine.low %v175_v19, %v179_v20 }
  0x67   :  { %v2967_v61 = vcombine.high %v132_v54, %v136_v56  ;;  %v2969_v63 = vcombine.high %v133_v57, %v137_v58  ;;  %v2966_v4 = vcombine.low %v132_v54, %v136_v56  ;;  %v2968_v5 = vcombine.low %v133_v57, %v137_v58  ;;  %v167_v27 = vld [vmem:[#allocation5 + $0x118] sm:$0xff]  ;;  %v158_v32 = vld [vmem:[#allocation5 + $0xd0] sm:$0xff] }
  0x68   :  { %565 = vmatpush1.bf16.msra.mxu0 %v2998_v35  ;;  %606 = vmatpush1.bf16.msra.mxu1 %v3000_v36  ;;  %v171_v28 = vld [vmem:[#allocation5 + $0x138] sm:$0xff]  ;;  %v3003_v31 = vcombine.high %v166_v24, %v170_v26  ;;  %v162_v34 = vld [vmem:[#allocation5 + $0xf0] sm:$0xff] }
  0x69   :  { %566 = vmatprep.subr.bf16.mxu0 %v2991_v37  ;;  %607 = vmatprep.subr.bf16.mxu1 %v2993_v38  ;;  %v3005_v33 = vcombine.high %v167_v27, %v171_v28  ;;  %v159_v35 = vld [vmem:[#allocation5 + $0xd8] sm:$0xff]  ;;  %v3002_v37 = vcombine.low %v166_v24, %v170_v26  ;;  %v3004_v38 = vcombine.low %v167_v27, %v171_v28  ;;  %v150_v40 = vld [vmem:[#allocation5 + $0x90] sm:$0xff] }
  0x6a   :  { %v163_v36 = vld [vmem:[#allocation5 + $0xf8] sm:$0xff]  ;;  %v2995_v39 = vcombine.high %v158_v32, %v162_v34  ;;  %v154_v41 = vld [vmem:[#allocation5 + $0xb0] sm:$0xff] }
  0x6b   :  { %v151_v42 = vld [vmem:[#allocation5 + $0x98] sm:$0xff]  ;;  %v142_v47 = vld [vmem:[#allocation5 + $0x50] sm:$0xff] }
  0x6c   :  { %567 = vmatpush1.bf16.msra.mxu0 %v2990_v43  ;;  %608 = vmatpush1.bf16.msra.mxu1 %v2992_v44  ;;  %v155_v43 = vld [vmem:[#allocation5 + $0xb8] sm:$0xff]  ;;  %v2994_v44 = vcombine.low %v158_v32, %v162_v34  ;;  %v146_v49 = vld [vmem:[#allocation5 + $0x70] sm:$0xff] }
  0x6d   :  { %568 = vmatprep.subr.bf16.mxu0 %v2983_v45  ;;  %609 = vmatprep.subr.bf16.mxu1 %v2985_v46  ;;  %v2996_v45 = vcombine.low %v159_v35, %v163_v36  ;;  %v2987_v46 = vcombine.high %v150_v40, %v154_v41  ;;  %v2989_v48 = vcombine.high %v151_v42, %v155_v43  ;;  %v143_v50 = vld [vmem:[#allocation5 + $0x58] sm:$0xff]  ;;  %v138_v57 = vld [vmem:[#allocation5 + $0x30] sm:$0xff] }
  0x6e   :  { %v2979_v54 = vcombine.high %v142_v47, %v146_v49  ;;  %v135_v58 = vld [vmem:[#allocation5 + $0x18] sm:$0xff]  ;;  %v3481_v1 = vld [vmem:[#allocation8 + $0xac] ss:$12 sps:$4 sm:$0xff]   ;;  %v3493_v11 = vld [vmem:[#allocation8 + $0x7c] ss:$12 sps:$4 sm:$0xff]  }
  0x6f   :  { %v3484_v3 = vld [vmem:[#allocation8 + $0x22c] ss:$12 sps:$4 sm:$0xff]   ;;  %v3487_v7 = vld [vmem:[#allocation8 + $0x94] ss:$12 sps:$4 sm:$0xff]   ;;  %v3485_v9 = vld [vmem:[#allocation8 + $0x90] ss:$12 sps:$4 sm:$0xff]  }
  0x70   :  { %569 = vmatpush1.bf16.msra.mxu0 %v2982_v51  ;;  %610 = vmatpush1.bf16.msra.mxu1 %v2984_v52  ;;  %v147_v51 = vld [vmem:[#allocation5 + $0x78] sm:$0xff]  ;;  %v2986_v52 = vcombine.low %v150_v40, %v154_v41  ;;  %v3497_v18 = vld [vmem:[#allocation8 + $0x60] ss:$12 sps:$4 sm:$0xff]   ;;  %v3517_v27 = vld [vmem:[#allocation8 + $0x1c] ss:$12 sps:$4 sm:$0xff]  }
  0x71   :  { %570 = vmatprep.subr.bf16.mxu0 %v2975_v53  ;;  %611 = vmatprep.subr.bf16.mxu1 %v2977_v55  ;;  %v2988_v53 = vcombine.low %v151_v42, %v155_v43  ;;  %v134_v55 = vld [vmem:[#allocation5 + $0x10] sm:$0xff]  ;;  %v2981_v56 = vcombine.high %v143_v50, %v147_v51  ;;  %v3488_v10 = vld [vmem:[#allocation8 + $0x210] ss:$12 sps:$4 sm:$0xff]   ;;  %v3514_v24 = vld [vmem:[#allocation8 + $0x1b4] ss:$12 sps:$4 sm:$0xff]  }
  0x72   :  { %v2971_v62 = vcombine.high %v134_v55, %v138_v57  ;;  %v2970_v2 = vcombine.low %v134_v55, %v138_v57  ;;  %v3499_v16 = vld [vmem:[#allocation8 + $0x64] ss:$12 sps:$4 sm:$0xff]   ;;  %v3500_v19 = vld [vmem:[#allocation8 + $0x1e0] ss:$12 sps:$4 sm:$0xff]   ;;  %v3520_v28 = vld [vmem:[#allocation8 + $0x19c] ss:$12 sps:$4 sm:$0xff]  }
  0x73   :  { %v3505_v20 = vld [vmem:[#allocation8 + $0x4c] ss:$12 sps:$4 sm:$0xff]   ;;  %v3512_v26 = vld [vmem:[#allocation8 + $0x1b0] ss:$12 sps:$4 sm:$0xff]   ;;  %v3538_v40 = vld [vmem:[#allocation8 + $0x2d4] ss:$12 sps:$4 sm:$0xff]  }
  0x74   :  { %571 = vmatpush1.bf16.msra.mxu0 %v2974_v59  ;;  %612 = vmatpush1.bf16.msra.mxu1 %v2976_v60  ;;  %v139_v59 = vld [vmem:[#allocation5 + $0x38] sm:$0xff]  ;;  %v2978_v60 = vcombine.low %v142_v47, %v146_v49  ;;  %v3524_v34 = vld [vmem:[#allocation8 + $0x180] ss:$12 sps:$4 sm:$0xff]   ;;  %v3541_v42 = vld [vmem:[#allocation8 + $0x13c] ss:$12 sps:$4 sm:$0xff]  }
  0x75   :  { %572 = vmatprep.subr.bf16.mxu0 %v2967_v61  ;;  %613 = vmatprep.subr.bf16.mxu1 %v2969_v63  ;;  %v2980_v61 = vcombine.low %v143_v50, %v147_v51  ;;  %v2973_v63 = vcombine.high %v135_v58, %v139_v59  ;;  %v3526_v32 = vld [vmem:[#allocation8 + $0x184] ss:$12 sps:$4 sm:$0xff]   ;;  %v3544_v43 = vld [vmem:[#allocation8 + $0x2bc] ss:$12 sps:$4 sm:$0xff]   ;;  %v3548_v49 = vld [vmem:[#allocation8 + $0x2a0] ss:$12 sps:$4 sm:$0xff]  }
  0x76   :  { %v3536_v41 = vld [vmem:[#allocation8 + $0x2d0] ss:$12 sps:$4 sm:$0xff]   ;;  %v3553_v50 = vld [vmem:[#allocation8 + $0x10c] ss:$12 sps:$4 sm:$0xff]   ;;  %v3562_v55 = vld [vmem:[#allocation8 + $0x274] ss:$12 sps:$4 sm:$0xff]  }
  0x77   :  { %v3550_v47 = vld [vmem:[#allocation8 + $0x2a4] ss:$12 sps:$4 sm:$0xff]   ;;  %v3556_v51 = vld [vmem:[#allocation8 + $0x28c] ss:$12 sps:$4 sm:$0xff]  }
  0x78   :  { %573 = vmatpush1.bf16.msra.mxu0 %v2966_v4  ;;  %614 = vmatpush1.bf16.msra.mxu1 %v2968_v5  ;;  %v2972_v4 = vcombine.low %v135_v58, %v139_v59  ;;  %v3479_v5 = vld [vmem:[#allocation8 + $0xa8] ss:$12 sps:$4 sm:$0xff]   ;;  %v3560_v57 = vld [vmem:[#allocation8 + $0x270] ss:$12 sps:$4 sm:$0xff]  }
  0x79   :  { %640 = vmatprep.subr.bf16.mxu0 %v3027_v6  ;;  %681 = vmatprep.subr.bf16.mxu1 %v3029_v8  ;;  %v3482_v6 = vld [vmem:[#allocation8 + $0x228] ss:$12 sps:$4 sm:$0xff]  }
  0x7a   :  { %v3490_v8 = vld [vmem:[#allocation8 + $0x214] ss:$12 sps:$4 sm:$0xff]   ;;  %v3565_v58 = vld [vmem:[#allocation8 + $0xdc] ss:$12 sps:$4 sm:$0xff]  }
  0x7b   :  { %591 = vmatmul.mubr.bf16.vlgmr.msra.gmra.mxu0 %v4065_v12  ;;  %632 = vmatmul.mubr.bf16.vlgmr.msra.gmra.mxu1 %v4065_v12  ;;  %v3568_v59 = vld [vmem:[#allocation8 + $0x25c] ss:$12 sps:$4 sm:$0xff]  }
  0x7c   :  { %641 = vmatpush1.bf16.msra.mxu0 %v3026_v13  ;;  %682 = vmatpush1.bf16.msra.mxu1 %v3028_v14  ;;  %v3496_v13 = vld [vmem:[#allocation8 + $0x1fc] ss:$12 sps:$4 sm:$0xff]   ;;  %v3491_v14 = vld [vmem:[#allocation8 + $0x78] ss:$12 sps:$4 sm:$0xff]  }
  0x7d   :  { %642 = vmatprep.subr.bf16.mxu0 %v3019_v15  ;;  %683 = vmatprep.subr.bf16.mxu1 %v3021_v17  ;;  %v3494_v15 = vld [vmem:[#allocation8 + $0x1f8] ss:$12 sps:$4 sm:$0xff]  }
  0x7e   :  { %672 = vmatprep.mubr.bf16.mxu0 %v3966_v0  ;;  %713 = vmatprep.mubr.bf16.mxu1 %v3966_v0  ;;  %v2997_v0 = vcombine.high %v159_v35, %v163_v36  ;;  %v3502_v17 = vld [vmem:[#allocation8 + $0x1e4] ss:$12 sps:$4 sm:$0xff]   ;;  %v3529_v35 = vld [vmem:[#allocation8 + $0x16c] ss:$12 sps:$4 sm:$0xff]  }
  0x7f   :  { %v3532_v36 = vld [vmem:[#allocation8 + $0x2ec] ss:$12 sps:$4 sm:$0xff]  }
  0x80   :  { %643 = vmatpush1.bf16.msra.mxu0 %v3018_v21  ;;  %684 = vmatpush1.bf16.msra.mxu1 %v3020_v22  ;;  %v3508_v21 = vld [vmem:[#allocation8 + $0x1cc] ss:$12 sps:$4 sm:$0xff]   ;;  %v3506_v22 = vld [vmem:[#allocation8 + $0x1c8] ss:$12 sps:$4 sm:$0xff]  }
  0x81   :  { %644 = vmatprep.subr.bf16.mxu0 %v3011_v23  ;;  %685 = vmatprep.subr.bf16.mxu1 %v3013_v25  ;;  %v3511_v23 = vld [vmem:[#allocation8 + $0x34] ss:$12 sps:$4 sm:$0xff]   ;;  %v3509_v25 = vld [vmem:[#allocation8 + $0x30] ss:$12 sps:$4 sm:$0xff]  }
  0x84   :  { %645 = vmatpush1.bf16.msra.mxu0 %v3010_v29  ;;  %686 = vmatpush1.bf16.msra.mxu1 %v3012_v30  ;;  %v3515_v29 = vld [vmem:[#allocation8 + $0x18] ss:$12 sps:$4 sm:$0xff]  }
  0x85   :  { %646 = vmatprep.subr.bf16.mxu0 %v3003_v31  ;;  %687 = vmatprep.subr.bf16.mxu1 %v3005_v33  ;;  %v3518_v30 = vld [vmem:[#allocation8 + $0x198] ss:$12 sps:$4 sm:$0xff]   ;;  %v3521_v33 = vld [vmem:[#allocation8] ss:$12 sps:$4 sm:$0xff]  }
  0x86   :  { %v3523_v31 = vld [vmem:[#allocation8 + $0x4] ss:$12 sps:$4 sm:$0xff]  }
  0x88   :  { %647 = vmatpush1.bf16.msra.mxu0 %v3002_v37  ;;  %688 = vmatpush1.bf16.msra.mxu1 %v3004_v38  ;;  %v3527_v37 = vld [vmem:[#allocation8 + $0x168] ss:$12 sps:$4 sm:$0xff]  }
  0x89   :  { %648 = vmatprep.subr.bf16.mxu0 %v2995_v39  ;;  %689 = vmatprep.subr.bf16.mxu1 %v2997_v0  ;;  %v3530_v38 = vld [vmem:[#allocation8 + $0x2e8] ss:$12 sps:$4 sm:$0xff]   ;;  %v3533_v0 = vld [vmem:[#allocation8 + $0x150] ss:$12 sps:$4 sm:$0xff]  }
  0x8a   :  { %v3535_v39 = vld [vmem:[#allocation8 + $0x154] ss:$12 sps:$4 sm:$0xff]  }
  0x8c   :  { %649 = vmatpush1.bf16.msra.mxu0 %v2994_v44  ;;  %690 = vmatpush1.bf16.msra.mxu1 %v2996_v45  ;;  %v3539_v44 = vld [vmem:[#allocation8 + $0x138] ss:$12 sps:$4 sm:$0xff]  }
  0x8d   :  { %650 = vmatprep.subr.bf16.mxu0 %v2987_v46  ;;  %691 = vmatprep.subr.bf16.mxu1 %v2989_v48  ;;  %v3542_v45 = vld [vmem:[#allocation8 + $0x2b8] ss:$12 sps:$4 sm:$0xff]   ;;  %v3545_v48 = vld [vmem:[#allocation8 + $0x120] ss:$12 sps:$4 sm:$0xff]  }
  0x8e   :  { %v3547_v46 = vld [vmem:[#allocation8 + $0x124] ss:$12 sps:$4 sm:$0xff]  }
  0x90   :  { %651 = vmatpush1.bf16.msra.mxu0 %v2986_v52  ;;  %692 = vmatpush1.bf16.msra.mxu1 %v2988_v53  ;;  %v3551_v52 = vld [vmem:[#allocation8 + $0x108] ss:$12 sps:$4 sm:$0xff]  }
  0x91   :  { %652 = vmatprep.subr.bf16.mxu0 %v2979_v54  ;;  %693 = vmatprep.subr.bf16.mxu1 %v2981_v56  ;;  %v3554_v53 = vld [vmem:[#allocation8 + $0x288] ss:$12 sps:$4 sm:$0xff]   ;;  %v3557_v56 = vld [vmem:[#allocation8 + $0xf0] ss:$12 sps:$4 sm:$0xff]  }
  0x92   :  { %v3559_v54 = vld [vmem:[#allocation8 + $0xf4] ss:$12 sps:$4 sm:$0xff]  }
  0x94   :  { %653 = vmatpush1.bf16.msra.mxu0 %v2978_v60  ;;  %694 = vmatpush1.bf16.msra.mxu1 %v2980_v61  ;;  %v3563_v60 = vld [vmem:[#allocation8 + $0xd8] ss:$12 sps:$4 sm:$0xff]  }
  0x95   :  { %654 = vmatprep.subr.bf16.mxu0 %v2971_v62  ;;  %695 = vmatprep.subr.bf16.mxu1 %v2973_v63  ;;  %v3566_v61 = vld [vmem:[#allocation8 + $0x258] ss:$12 sps:$4 sm:$0xff]  }
  0x96   :  { %v3571_v62 = vld [vmem:[#allocation8 + $0xc4] ss:$12 sps:$4 sm:$0xff]  }
  0x97   :  { %v3574_v63 = vld [vmem:[#allocation8 + $0x244] ss:$12 sps:$4 sm:$0xff]  }
  0x98   :  { %655 = vmatpush1.bf16.msra.mxu0 %v2970_v2  ;;  %696 = vmatpush1.bf16.msra.mxu1 %v2972_v4  ;;  %v3572_v2 = vld [vmem:[#allocation8 + $0x240] ss:$12 sps:$4 sm:$0xff]   ;;  %v3576_v4 = vld [vmem:[#allocation8 + $0x2f0] ss:$12 sps:$4 sm:$0xff]  }
  0x99   :  { %1395 = vmatprep.subr.bf16.mxu0 %v3481_v1  ;;  %1436 = vmatprep.subr.bf16.mxu1 %v3484_v3  ;;  %v3569_v1 = vld [vmem:[#allocation8 + $0xc0] ss:$12 sps:$4 sm:$0xff]   ;;  %v3575_v3 = vld [vmem:[#allocation8 + $0x170] ss:$12 sps:$4 sm:$0xff]  }
  0x9b   :  { %673 = vmatmul.mubr.bf16.vlgmr.msra.gmra.mxu0 %v4065_v12  ;;  %714 = vmatmul.mubr.bf16.vlgmr.msra.gmra.mxu1 %v4065_v12  ;;  %v3503_v12 = vld [vmem:[#allocation8 + $0x48] ss:$12 sps:$4 sm:$0xff]  }
  0x9c   :  { %1396 = vmatpush1.bf16.msra.mxu0 %v3479_v5  ;;  %1437 = vmatpush1.bf16.msra.mxu1 %v3482_v6  ;;  %v198_v5 = vlaneseq }
  0x9d   :  { %1397 = vmatprep.subr.bf16.mxu0 %v3487_v7  ;;  %1438 = vmatprep.subr.bf16.mxu1 %v3490_v8  ;;  %v4078_v8 = vld [vmem:[#allocation7] sm:$0xff] }
  0x9e   :  { %v4073_v6 = vshrl.u32 %v198_v5, 7 }
  0xa0   :  { %1398 = vmatpush1.bf16.msra.mxu0 %v3485_v9  ;;  %1439 = vmatpush1.bf16.msra.mxu1 %v3488_v10  ;;  %v4076_v7 = vsub.s32 0, %v4073_v6  ;;  %v4081_v9 = vsub.s32 2, %v4073_v6  ;;  %v4084_v10 = vsub.s32 1, %v4073_v6 }
  0xa1   :  { %1399 = vmatprep.subr.bf16.mxu0 %v3493_v11  ;;  %1440 = vmatprep.subr.bf16.mxu1 %v3496_v13  ;;  %v212_v11 = vsub.s32 3, %v4073_v6 }
  0xa2   :  { %v201_v13 = vrot.slane %v4078_v8, %v4076_v7 }
  0xa4   :  { %1400 = vmatpush1.bf16.msra.mxu0 %v3491_v14  ;;  %1441 = vmatpush1.bf16.msra.mxu1 %v3494_v15  ;;  %v209_v14 = vrot.slane %v4078_v8, %v4081_v9  ;;  %v205_v15 = vrot.slane %v4078_v8, %v4084_v10 }
  0xa5   :  { %1401 = vmatprep.subr.bf16.mxu0 %v3499_v16  ;;  %1442 = vmatprep.subr.bf16.mxu1 %v3502_v17  ;;  %v213_v17 = vrot.slane %v4078_v8, %v212_v11 }
  0xa8   :  { %1402 = vmatpush1.bf16.msra.mxu0 %v3497_v18  ;;  %1443 = vmatpush1.bf16.msra.mxu1 %v3500_v19 }
  0xa9   :  { %1403 = vmatprep.subr.bf16.mxu0 %v3505_v20  ;;  %1444 = vmatprep.subr.bf16.mxu1 %v3508_v21 }
  0xac   :  { %1404 = vmatpush1.bf16.msra.mxu0 %v3503_v12  ;;  %1445 = vmatpush1.bf16.msra.mxu1 %v3506_v22 }
  0xad   :  { %1405 = vmatprep.subr.bf16.mxu0 %v3511_v23  ;;  %1446 = vmatprep.subr.bf16.mxu1 %v3514_v24 }
  0xb0   :  { %1406 = vmatpush1.bf16.msra.mxu0 %v3509_v25  ;;  %1447 = vmatpush1.bf16.msra.mxu1 %v3512_v26 }
  0xb1   :  { %1407 = vmatprep.subr.bf16.mxu0 %v3517_v27  ;;  %1448 = vmatprep.subr.bf16.mxu1 %v3520_v28 }
  0xb4   :  { %1408 = vmatpush1.bf16.msra.mxu0 %v3515_v29  ;;  %1449 = vmatpush1.bf16.msra.mxu1 %v3518_v30 }
  0xb5   :  { %1409 = vmatprep.subr.bf16.mxu0 %v3523_v31  ;;  %1450 = vmatprep.subr.bf16.mxu1 %v3526_v32 }
  0xb8   :  { %1410 = vmatpush1.bf16.msra.mxu0 %v3521_v33  ;;  %1451 = vmatpush1.bf16.msra.mxu1 %v3524_v34  ;;  %v3577_v34 = vld [vmem:[#allocation8 + $0xb0] ss:$12 sps:$4 sm:$0xff]  }
  0xb9   :  { %1411 = vmatprep.subr.bf16.mxu0 %v3529_v35  ;;  %1452 = vmatprep.subr.bf16.mxu1 %v3532_v36 }
  0xbc   :  { %1412 = vmatpush2.bf16.msra.mxu0 %v3527_v37  ;;  %1453 = vmatpush2.bf16.msra.mxu1 %v3530_v38  ;;  %v3578_v37 = vld [vmem:[#allocation8 + $0x230] ss:$12 sps:$4 sm:$0xff]   ;;  %v3579_v38 = vld [vmem:[#allocation8 + $0x158] ss:$12 sps:$4 sm:$0xff]  }
  0xbd   :  { %1413 = vmatprep.subr.bf16.mxu0 %v3535_v39  ;;  %1454 = vmatprep.subr.bf16.mxu1 %v3538_v40  ;;  %v3580_v39 = vld [vmem:[#allocation8 + $0x2d8] ss:$12 sps:$4 sm:$0xff]  }
  0xbe   :  { %v3581_v40 = vld [vmem:[#allocation8 + $0x98] ss:$12 sps:$4 sm:$0xff]  }
  0xc0   :  { %1414 = vmatpush2.bf16.msra.mxu0 %v3533_v0  ;;  %1455 = vmatpush2.bf16.msra.mxu1 %v3536_v41  ;;  %v3582_v0 = vld [vmem:[#allocation8 + $0x218] ss:$12 sps:$4 sm:$0xff]   ;;  %v3583_v41 = vld [vmem:[#allocation8 + $0x140] ss:$12 sps:$4 sm:$0xff]  }
  0xc1   :  { %1415 = vmatprep.subr.bf16.mxu0 %v3541_v42  ;;  %1456 = vmatprep.subr.bf16.mxu1 %v3544_v43  ;;  %v3584_v42 = vld [vmem:[#allocation8 + $0x2c0] ss:$12 sps:$4 sm:$0xff]  }
  0xc2   :  { %v3585_v43 = vld [vmem:[#allocation8 + $0x80] ss:$12 sps:$4 sm:$0xff]  }
  0xc4   :  { %1416 = vmatpush2.bf16.msra.mxu0 %v3539_v44  ;;  %1457 = vmatpush2.bf16.msra.mxu1 %v3542_v45  ;;  %v3586_v44 = vld [vmem:[#allocation8 + $0x200] ss:$12 sps:$4 sm:$0xff]   ;;  %v3587_v45 = vld [vmem:[#allocation8 + $0x128] ss:$12 sps:$4 sm:$0xff]  }
  0xc5   :  { %1417 = vmatprep.subr.bf16.mxu0 %v3547_v46  ;;  %1458 = vmatprep.subr.bf16.mxu1 %v3550_v47  ;;  %v3588_v46 = vld [vmem:[#allocation8 + $0x2a8] ss:$12 sps:$4 sm:$0xff]  }
  0xc6   :  { %v3589_v47 = vld [vmem:[#allocation8 + $0x68] ss:$12 sps:$4 sm:$0xff]  }
  0xc8   :  { %1418 = vmatpush2.bf16.msra.mxu0 %v3545_v48  ;;  %1459 = vmatpush2.bf16.msra.mxu1 %v3548_v49  ;;  %v3590_v48 = vld [vmem:[#allocation8 + $0x1e8] ss:$12 sps:$4 sm:$0xff]   ;;  %v3591_v49 = vld [vmem:[#allocation8 + $0x110] ss:$12 sps:$4 sm:$0xff]  }
  0xc9   :  { %1419 = vmatprep.subr.bf16.mxu0 %v3553_v50  ;;  %1460 = vmatprep.subr.bf16.mxu1 %v3556_v51  ;;  %v3592_v50 = vld [vmem:[#allocation8 + $0x290] ss:$12 sps:$4 sm:$0xff]  }
  0xca   :  { %v3593_v51 = vld [vmem:[#allocation8 + $0x50] ss:$12 sps:$4 sm:$0xff]  }
  0xcc   :  { %1420 = vmatpush2.bf16.msra.mxu0 %v3551_v52  ;;  %1461 = vmatpush2.bf16.msra.mxu1 %v3554_v53  ;;  %v3594_v52 = vld [vmem:[#allocation8 + $0x1d0] ss:$12 sps:$4 sm:$0xff]   ;;  %v3595_v53 = vld [vmem:[#allocation8 + $0xf8] ss:$12 sps:$4 sm:$0xff]  }
  0xcd   :  { %1421 = vmatprep.subr.bf16.mxu0 %v3559_v54  ;;  %1462 = vmatprep.subr.bf16.mxu1 %v3562_v55  ;;  %v3596_v54 = vld [vmem:[#allocation8 + $0x278] ss:$12 sps:$4 sm:$0xff]  }
  0xce   :  { %v3597_v55 = vld [vmem:[#allocation8 + $0x38] ss:$12 sps:$4 sm:$0xff]  }
  0xd0   :  { %1422 = vmatpush2.bf16.msra.mxu0 %v3557_v56  ;;  %1463 = vmatpush2.bf16.msra.mxu1 %v3560_v57  ;;  %v220_v56 = vsub.s32 5, %v4073_v6  ;;  %v3598_v57 = vld [vmem:[#allocation8 + $0x1b8] ss:$12 sps:$4 sm:$0xff]  }
  0xd1   :  { %1423 = vmatprep.subr.bf16.mxu0 %v3565_v58  ;;  %1464 = vmatprep.subr.bf16.mxu1 %v3568_v59  ;;  %v3599_v58 = vld [vmem:[#allocation8 + $0xe0] ss:$12 sps:$4 sm:$0xff]   ;;  %v228_v59 = vsub.s32 7, %v4073_v6 }
  0xd4   :  { %1424 = vmatpush2.bf16.msra.mxu0 %v3563_v60  ;;  %1465 = vmatpush2.bf16.msra.mxu1 %v3566_v61  ;;  %v3600_v60 = vld [vmem:[#allocation8 + $0x260] ss:$12 sps:$4 sm:$0xff]  }
  0xd5   :  { %1425 = vmatprep.subr.bf16.mxu0 %v3571_v62  ;;  %1466 = vmatprep.subr.bf16.mxu1 %v3574_v63  ;;  %v3601_v61 = vld [vmem:[#allocation8 + $0x20] ss:$12 sps:$4 sm:$0xff]   ;;  %v221_v62 = vrot.slane %v4078_v8, %v220_v56 }
  0xd6   :  { %v3602_v63 = vld [vmem:[#allocation8 + $0x1a0] ss:$12 sps:$4 sm:$0xff]  }
  0xd7   :  { %v3657_v56 = vld [vmem:[#allocation10 + $0x16c] ss:$12 sps:$4 sm:$0xff]  }
  0xd8   :  { %1426 = vmatpush2.bf16.msra.mxu0 %v3569_v1  ;;  %1467 = vmatpush2.bf16.msra.mxu1 %v3572_v2  ;;  %v3603_v1 = vld [vmem:[#allocation8 + $0xc8] ss:$12 sps:$4 sm:$0xff]  }
  0xd9   :  { %3272 = vmatprep.subr.bf16.mxu0 %v3575_v3  ;;  %3294 = vmatprep.subr.bf16.mxu1 %v3576_v4  ;;  %v229_v3 = vrot.slane %v4078_v8, %v228_v59  ;;  %v3604_v4 = vld [vmem:[#allocation8 + $0x248] ss:$12 sps:$4 sm:$0xff]  }
  0xda   :  { %v3658_v59 = vld [vmem:[#allocation10 + $0x2e8] ss:$12 sps:$4 sm:$0xff]  }
 0x13b   :  { %v592_v16 = vpop.f32.mrf.mxu0  ;;  %v633_v19 = vpop.f32.mrf.mxu1 }
 0x13c   :  { %v593_v18 = vadd.f32 %v592_v16, %v201_v13  ;;  %v634_v20 = vadd.f32 %v633_v19, %v209_v14  ;;  %v3605_v13 = vld [vmem:[#allocation8 + $0x8] ss:$12 sps:$4 sm:$0xff]  }
 0x13d   :  { %v594_v21 = vpop.f32.mrf.mxu0  ;;  %v635_v22 = vpop.f32.mrf.mxu1  ;;  %v3606_v16 = vld [vmem:[#allocation8 + $0x188] ss:$12 sps:$4 sm:$0xff]  }
 0x13e   :  { %v595_v12 = vadd.f32 %v594_v21, %v205_v15  ;;  %v722_v23 = vmax.f32 %v593_v18, 0.0  ;;  %v724_v24 = vmax.f32 %v634_v20, 0.0  ;;  %v636_v25 = vadd.f32 %v635_v22, %v213_v17  ;;  %v3609_v17 = vld [vmem:[#allocation10 + $0xac] ss:$12 sps:$4 sm:$0xff]  }
 0x13f   :  { %v596_v26 = vpop.f32.mrf.mxu0  ;;  %v637_v28 = vpop.f32.mrf.mxu1  ;;  %v3612_v20 = vld [vmem:[#allocation10 + $0x22c] ss:$12 sps:$4 sm:$0xff]  }
 0x140   :  { %v723_v27 = vmax.f32 %v595_v12, 0.0  ;;  %v725_v29 = vmax.f32 %v636_v25, 0.0  ;;  %v4094_v31 = vpack.c.bf16 %v724_v24, %v724_v24  ;;  %v4096_v35 = vpack.c.bf16 %v722_v23, %v722_v23  ;;  %v3607_v24 = vld [vmem:[#allocation10 + $0xa8] ss:$12 sps:$4 sm:$0xff]  }
 0x141   :  { %v597_v30 = vpop.f32.mrf.mxu0  ;;  %v638_v33 = vpop.f32.mrf.mxu1  ;;  %v3610_v26 = vld [vmem:[#allocation10 + $0x228] ss:$12 sps:$4 sm:$0xff]  }
 0x142   :  { %v731_v32 = vpack.c.bf16 %v723_v27, %v723_v27  ;;  %v733_v36 = vpack.c.bf16 %v725_v29, %v725_v29  ;;  %v3615_v27 = vld [vmem:[#allocation10 + $0x94] ss:$12 sps:$4 sm:$0xff]   ;;  %v3616_v33 = vld [vmem:[#allocation10 + $0x210] ss:$12 sps:$4 sm:$0xff]  }
 0x143   :  { %v3618_v28 = vld [vmem:[#allocation10 + $0x214] ss:$12 sps:$4 sm:$0xff]  }
 0x144   :  { %1427 = vmatprep.mubr.bf16.mxu0 %v731_v32  ;;  %1468 = vmatprep.mubr.bf16.mxu1 %v733_v36 }
 0x145   :  { %1428 = vmatmul.mubr.bf16.vlgmr.msra.gmra.mxu0 %v4096_v35  ;;  %1469 = vmatmul.mubr.bf16.vlgmr.msra.gmra.mxu1 %v4094_v31 }
 0x146   :  { %3273 = vmatpush3.bf16.msra.mxu0 %v3577_v34  ;;  %3295 = vmatpush3.bf16.msra.mxu1 %v3578_v37  ;;  %v3621_v34 = vld [vmem:[#allocation10 + $0x7c] ss:$12 sps:$4 sm:$0xff]   ;;  %v3619_v37 = vld [vmem:[#allocation10 + $0x78] ss:$12 sps:$4 sm:$0xff]  }
 0x147   :  { %1509 = vmatprep.mubr.bf16.mxu0 %v731_v32  ;;  %1549 = vmatprep.mubr.bf16.mxu1 %v733_v36  ;;  %v3613_v32 = vld [vmem:[#allocation10 + $0x90] ss:$12 sps:$4 sm:$0xff]  }
 0x148   :  { %3274 = vmatprep.subr.bf16.mxu0 %v3579_v38  ;;  %3296 = vmatprep.subr.bf16.mxu1 %v3580_v39  ;;  %v3624_v36 = vld [vmem:[#allocation10 + $0x1fc] ss:$12 sps:$4 sm:$0xff]   ;;  %v3627_v38 = vld [vmem:[#allocation10 + $0x64] ss:$12 sps:$4 sm:$0xff]   ;;  %v3625_v39 = vld [vmem:[#allocation10 + $0x60] ss:$12 sps:$4 sm:$0xff]  }
 0x14a   :  { %3275 = vmatpush3.bf16.msra.mxu0 %v3581_v40  ;;  %3297 = vmatpush3.bf16.msra.mxu1 %v3582_v0  ;;  %v3628_v40 = vld [vmem:[#allocation10 + $0x1e0] ss:$12 sps:$4 sm:$0xff]  }
 0x14b   :  { %3276 = vmatprep.subr.bf16.mxu0 %v3583_v41  ;;  %3298 = vmatprep.subr.bf16.mxu1 %v3584_v42  ;;  %v3633_v0 = vld [vmem:[#allocation10 + $0x4c] ss:$12 sps:$4 sm:$0xff]   ;;  %v3631_v42 = vld [vmem:[#allocation10 + $0x48] ss:$12 sps:$4 sm:$0xff]  }
 0x14c   :  { %v3636_v41 = vld [vmem:[#allocation10 + $0x1cc] ss:$12 sps:$4 sm:$0xff]  }
 0x14e   :  { %3277 = vmatpush3.bf16.msra.mxu0 %v3585_v43  ;;  %3299 = vmatpush3.bf16.msra.mxu1 %v3586_v44  ;;  %v3634_v43 = vld [vmem:[#allocation10 + $0x1c8] ss:$12 sps:$4 sm:$0xff]  }
 0x14f   :  { %3278 = vmatprep.subr.bf16.mxu0 %v3587_v45  ;;  %3300 = vmatprep.subr.bf16.mxu1 %v3588_v46  ;;  %v3639_v44 = vld [vmem:[#allocation10 + $0x34] ss:$12 sps:$4 sm:$0xff]   ;;  %v3637_v46 = vld [vmem:[#allocation10 + $0x30] ss:$12 sps:$4 sm:$0xff]  }
 0x150   :  { %v3642_v45 = vld [vmem:[#allocation10 + $0x1b4] ss:$12 sps:$4 sm:$0xff]  }
 0x152   :  { %3279 = vmatpush3.bf16.msra.mxu0 %v3589_v47  ;;  %3301 = vmatpush3.bf16.msra.mxu1 %v3590_v48  ;;  %v3640_v47 = vld [vmem:[#allocation10 + $0x1b0] ss:$12 sps:$4 sm:$0xff]  }
 0x153   :  { %3280 = vmatprep.subr.bf16.mxu0 %v3591_v49  ;;  %3302 = vmatprep.subr.bf16.mxu1 %v3592_v50  ;;  %v3645_v48 = vld [vmem:[#allocation10 + $0x1c] ss:$12 sps:$4 sm:$0xff]   ;;  %v3643_v50 = vld [vmem:[#allocation10 + $0x18] ss:$12 sps:$4 sm:$0xff]  }
 0x154   :  { %v3648_v49 = vld [vmem:[#allocation10 + $0x19c] ss:$12 sps:$4 sm:$0xff]  }
 0x156   :  { %3281 = vmatpush3.bf16.msra.mxu0 %v3593_v51  ;;  %3303 = vmatpush3.bf16.msra.mxu1 %v3594_v52  ;;  %v3646_v51 = vld [vmem:[#allocation10 + $0x198] ss:$12 sps:$4 sm:$0xff]  }
 0x157   :  { %3282 = vmatprep.subr.bf16.mxu0 %v3595_v53  ;;  %3304 = vmatprep.subr.bf16.mxu1 %v3596_v54  ;;  %v3651_v52 = vld [vmem:[#allocation10 + $0x4] ss:$12 sps:$4 sm:$0xff]   ;;  %v3649_v54 = vld [vmem:[#allocation10] ss:$12 sps:$4 sm:$0xff]  }
 0x158   :  { %v3654_v53 = vld [vmem:[#allocation10 + $0x184] ss:$12 sps:$4 sm:$0xff]  }
 0x15a   :  { %3283 = vmatpush3.bf16.msra.mxu0 %v3597_v55  ;;  %3305 = vmatpush3.bf16.msra.mxu1 %v3598_v57  ;;  %v3652_v55 = vld [vmem:[#allocation10 + $0x180] ss:$12 sps:$4 sm:$0xff]  }
 0x15b   :  { %3284 = vmatprep.subr.bf16.mxu0 %v3599_v58  ;;  %v4103_v2 = vpop.f32.mrf.mxu0  ;;  %3306 = vmatprep.subr.bf16.mxu1 %v3600_v60  ;;  %v4106_v5 = vpop.f32.mrf.mxu1  ;;  %v3660_v57 = vld [vmem:[#allocation10 + $0x2ec] ss:$12 sps:$4 sm:$0xff]   ;;  %v3655_v58 = vld [vmem:[#allocation10 + $0x168] ss:$12 sps:$4 sm:$0xff]  }
 0x15c   :  { %v3663_v60 = vld [vmem:[#allocation10 + $0x154] ss:$12 sps:$4 sm:$0xff]  }
 0x15d   :  { %v676_v11 = vpop.f32.mrf.mxu0  ;;  %v717_v15 = vpop.f32.mrf.mxu1 }
 0x15e   :  { %3285 = vmatpush3.bf16.msra.mxu0 %v3601_v61  ;;  %v677_v14 = vadd.f32 %v676_v11, %v221_v62  ;;  %3307 = vmatpush3.bf16.msra.mxu1 %v3602_v63  ;;  %v718_v19 = vadd.f32 %v717_v15, %v229_v3  ;;  %v3666_v61 = vld [vmem:[#allocation10 + $0x2d4] ss:$12 sps:$4 sm:$0xff]   ;;  %v3661_v62 = vld [vmem:[#allocation10 + $0x150] ss:$12 sps:$4 sm:$0xff]   ;;  %v3670_v11 = vld [vmem:[#allocation10 + $0x2b8] ss:$12 sps:$4 sm:$0xff]  }
 0x15f   :  { %3286 = vmatprep.subr.bf16.mxu0 %v3603_v1  ;;  %v678_v18 = vpop.f32.mrf.mxu0  ;;  %3308 = vmatprep.subr.bf16.mxu1 %v3604_v4  ;;  %v719_v12 = vpop.f32.mrf.mxu1  ;;  %v3664_v63 = vld [vmem:[#allocation10 + $0x2d0] ss:$12 sps:$4 sm:$0xff]   ;;  %v3667_v4 = vld [vmem:[#allocation10 + $0x138] ss:$12 sps:$4 sm:$0xff]   ;;  %v3673_v15 = vld [vmem:[#allocation10 + $0x120] ss:$12 sps:$4 sm:$0xff]  }
 0x160   :  { %v727_v21 = vmax.f32 %v677_v14, 0.0  ;;  %v729_v22 = vmax.f32 %v718_v19, 0.0  ;;  %v3669_v1 = vld [vmem:[#allocation10 + $0x13c] ss:$12 sps:$4 sm:$0xff]   ;;  %v3678_v14 = vld [vmem:[#allocation10 + $0x2a4] ss:$12 sps:$4 sm:$0xff]  }
 0x161   :  { %v679_v23 = vpop.f32.mrf.mxu0  ;;  %v720_v25 = vpop.f32.mrf.mxu1  ;;  %v3672_v3 = vld [vmem:[#allocation10 + $0x2bc] ss:$12 sps:$4 sm:$0xff]   ;;  %v3684_v18 = vld [vmem:[#allocation10 + $0x28c] ss:$12 sps:$4 sm:$0xff]   ;;  %v216_v12 = vsub.s32 4, %v4073_v6 }
 0x162   :  { %3287 = vmatpush3.bf16.msra.mxu0 %v3605_v13  ;;  %3309 = vmatpush3.bf16.msra.mxu1 %v3606_v16  ;;  %v4108_v29 = vpack.c.bf16 %v727_v21, %v727_v21  ;;  %v4111_v30 = vpack.c.bf16 %v729_v22, %v729_v22  ;;  %v3675_v13 = vld [vmem:[#allocation10 + $0x124] ss:$12 sps:$4 sm:$0xff]   ;;  %v3676_v16 = vld [vmem:[#allocation10 + $0x2a0] ss:$12 sps:$4 sm:$0xff]   ;;  %v3679_v19 = vld [vmem:[#allocation10 + $0x108] ss:$12 sps:$4 sm:$0xff]  }
 0x163   :  { %2220 = vmatprep.subr.bf16.mxu0 %v3609_v17  ;;  %2261 = vmatprep.subr.bf16.mxu1 %v3612_v20  ;;  %v3681_v17 = vld [vmem:[#allocation10 + $0x10c] ss:$12 sps:$4 sm:$0xff]   ;;  %v224_v20 = vsub.s32 6, %v4073_v6  ;;  %v3682_v21 = vld [vmem:[#allocation10 + $0x288] ss:$12 sps:$4 sm:$0xff]  }
 0x164   :  { %v3687_v22 = vld [vmem:[#allocation10 + $0xf4] ss:$12 sps:$4 sm:$0xff]   ;;  %v3685_v25 = vld [vmem:[#allocation10 + $0xf0] ss:$12 sps:$4 sm:$0xff]  }
 0x165   :  { %1510 = vmatmul.mubr.bf16.vlgmr.msra.gmra.mxu0 %v4096_v35  ;;  %1550 = vmatmul.mubr.bf16.vlgmr.msra.gmra.mxu1 %v4094_v31  ;;  %v3622_v35 = vld [vmem:[#allocation10 + $0x1f8] ss:$12 sps:$4 sm:$0xff]   ;;  %v3690_v23 = vld [vmem:[#allocation10 + $0x274] ss:$12 sps:$4 sm:$0xff]  }
 0x166   :  { %2221 = vmatpush1.bf16.msra.mxu0 %v3607_v24  ;;  %2262 = vmatpush1.bf16.msra.mxu1 %v3610_v26  ;;  %v3630_v31 = vld [vmem:[#allocation10 + $0x1e4] ss:$12 sps:$4 sm:$0xff]   ;;  %v225_v24 = vrot.slane %v4078_v8, %v224_v20  ;;  %v217_v26 = vrot.slane %v4078_v8, %v216_v12  ;;  %v3697_v8 = vld [vmem:[#allocation10 + $0xc0] ss:$12 sps:$4 sm:$0xff]  }
 0x167   :  { %2222 = vmatprep.subr.bf16.mxu0 %v3615_v27  ;;  %2263 = vmatprep.subr.bf16.mxu1 %v3618_v28  ;;  %v3688_v27 = vld [vmem:[#allocation10 + $0x270] ss:$12 sps:$4 sm:$0xff]   ;;  %v3739_v20 = vld [vmem:[#allocation11 + $0x68] sm:$0xff]  }
 0x168   :  { %2252 = vmatprep.mubr.bf16.mxu0 %v4108_v29  ;;  %2293 = vmatprep.mubr.bf16.mxu1 %v4111_v30  ;;  %v3693_v28 = vld [vmem:[#allocation10 + $0xdc] ss:$12 sps:$4 sm:$0xff]   ;;  %v675_v6 = vadd.f32 %v4103_v2, %v217_v26  ;;  %v3754_v26 = vld [vmem:[#allocation11 + $0xa0] sm:$0xff]  }
 0x169   :  { %v3705_v2 = vld [vmem:[#allocation10 + $0xb0] ss:$12 sps:$4 sm:$0xff]   ;;  %v3740_v12 = vld [vmem:[#allocation11 + $0x28] sm:$0xff]  }
 0x16a   :  { %2223 = vmatpush1.bf16.msra.mxu0 %v3613_v32  ;;  %2264 = vmatpush1.bf16.msra.mxu1 %v3616_v33  ;;  %v3696_v32 = vld [vmem:[#allocation10 + $0x25c] ss:$12 sps:$4 sm:$0xff]   ;;  %v716_v33 = vadd.f32 %v4106_v5, %v225_v24  ;;  %v3742_v24 = vld [vmem:[#allocation11 + $0x20] sm:$0xff]  }
 0x16b   :  { %2224 = vmatprep.subr.bf16.mxu0 %v3621_v34  ;;  %2265 = vmatprep.subr.bf16.mxu1 %v3624_v36  ;;  %v3691_v34 = vld [vmem:[#allocation10 + $0xd8] ss:$12 sps:$4 sm:$0xff]   ;;  %v3704_v5 = vld [vmem:[#allocation10 + $0x2f0] ss:$12 sps:$4 sm:$0xff]  }
 0x16c   :  { %v3694_v36 = vld [vmem:[#allocation10 + $0x258] ss:$12 sps:$4 sm:$0xff]  }
 0x16e   :  { %2225 = vmatpush1.bf16.msra.mxu0 %v3619_v37  ;;  %2266 = vmatpush1.bf16.msra.mxu1 %v3622_v35  ;;  %v3699_v37 = vld [vmem:[#allocation10 + $0xc4] ss:$12 sps:$4 sm:$0xff]  }
 0x16f   :  { %2226 = vmatprep.subr.bf16.mxu0 %v3627_v38  ;;  %2267 = vmatprep.subr.bf16.mxu1 %v3630_v31  ;;  %v3702_v35 = vld [vmem:[#allocation10 + $0x244] ss:$12 sps:$4 sm:$0xff]   ;;  %v728_v38 = vmax.f32 %v716_v33, 0.0  ;;  %v726_v31 = vmax.f32 %v675_v6, 0.0 }
 0x170   :  { %v3746_v33 = vld [vmem:[#allocation11 + $0x10] sm:$0xff]  }
 0x171   :  { %v3756_v6 = vld [vmem:[#allocation11 + $0x90] sm:$0xff]  }
 0x172   :  { %2227 = vmatpush1.bf16.msra.mxu0 %v3625_v39  ;;  %2268 = vmatpush1.bf16.msra.mxu1 %v3628_v40  ;;  %v3700_v39 = vld [vmem:[#allocation10 + $0x240] ss:$12 sps:$4 sm:$0xff]   ;;  %v3703_v40 = vld [vmem:[#allocation10 + $0x170] ss:$12 sps:$4 sm:$0xff]  }
 0x173   :  { %2228 = vmatprep.subr.bf16.mxu0 %v3633_v0  ;;  %2269 = vmatprep.subr.bf16.mxu1 %v3636_v41  ;;  %v4122_v0 = vpack.c.bf16 %v728_v38, %v728_v38  ;;  %v4124_v41 = vpack.c.bf16 %v726_v31, %v726_v31  ;;  %v3750_v38 = vld [vmem:[#allocation11] sm:$0xff]   ;;  %v3759_v31 = vld [vmem:[#allocation13 + $0x78] sm:$0xff]  }
 0x176   :  { %2229 = vmatpush1.bf16.msra.mxu0 %v3631_v42  ;;  %2270 = vmatpush1.bf16.msra.mxu1 %v3634_v43  ;;  %v3706_v42 = vld [vmem:[#allocation10 + $0x230] ss:$12 sps:$4 sm:$0xff]   ;;  %v3707_v43 = vld [vmem:[#allocation10 + $0x158] ss:$12 sps:$4 sm:$0xff]  }
 0x177   :  { %2230 = vmatprep.subr.bf16.mxu0 %v3639_v44  ;;  %2271 = vmatprep.subr.bf16.mxu1 %v3642_v45  ;;  %v3708_v44 = vld [vmem:[#allocation10 + $0x2d8] ss:$12 sps:$4 sm:$0xff]  }
 0x178   :  { %v3709_v45 = vld [vmem:[#allocation10 + $0x98] ss:$12 sps:$4 sm:$0xff]  }
 0x17a   :  { %2231 = vmatpush1.bf16.msra.mxu0 %v3637_v46  ;;  %2272 = vmatpush1.bf16.msra.mxu1 %v3640_v47  ;;  %v3710_v46 = vld [vmem:[#allocation10 + $0x218] ss:$12 sps:$4 sm:$0xff]   ;;  %v3711_v47 = vld [vmem:[#allocation10 + $0x140] ss:$12 sps:$4 sm:$0xff]  }
 0x17b   :  { %2232 = vmatprep.subr.bf16.mxu0 %v3645_v48  ;;  %2273 = vmatprep.subr.bf16.mxu1 %v3648_v49  ;;  %v3712_v48 = vld [vmem:[#allocation10 + $0x2c0] ss:$12 sps:$4 sm:$0xff]  }
 0x17c   :  { %v3713_v49 = vld [vmem:[#allocation10 + $0x80] ss:$12 sps:$4 sm:$0xff]  }
 0x17e   :  { %2233 = vmatpush1.bf16.msra.mxu0 %v3643_v50  ;;  %2274 = vmatpush1.bf16.msra.mxu1 %v3646_v51  ;;  %v3714_v50 = vld [vmem:[#allocation10 + $0x200] ss:$12 sps:$4 sm:$0xff]   ;;  %v3715_v51 = vld [vmem:[#allocation10 + $0x128] ss:$12 sps:$4 sm:$0xff]  }
 0x17f   :  { %2234 = vmatprep.subr.bf16.mxu0 %v3651_v52  ;;  %2275 = vmatprep.subr.bf16.mxu1 %v3654_v53  ;;  %v3716_v52 = vld [vmem:[#allocation10 + $0x2a8] ss:$12 sps:$4 sm:$0xff]  }
 0x180   :  { %v3717_v53 = vld [vmem:[#allocation10 + $0x68] ss:$12 sps:$4 sm:$0xff]  }
 0x182   :  { %2235 = vmatpush1.bf16.msra.mxu0 %v3649_v54  ;;  %2276 = vmatpush1.bf16.msra.mxu1 %v3652_v55  ;;  %v3719_v54 = vld [vmem:[#allocation10 + $0x110] ss:$12 sps:$4 sm:$0xff]  }
 0x183   :  { %2236 = vmatprep.subr.bf16.mxu0 %v3657_v56  ;;  %2277 = vmatprep.subr.bf16.mxu1 %v3660_v57  ;;  %v3720_v55 = vld [vmem:[#allocation10 + $0x290] ss:$12 sps:$4 sm:$0xff]   ;;  %v3723_v57 = vld [vmem:[#allocation10 + $0xf8] ss:$12 sps:$4 sm:$0xff]  }
 0x184   :  { %v3722_v56 = vld [vmem:[#allocation10 + $0x1d0] ss:$12 sps:$4 sm:$0xff]  }
 0x186   :  { %2237 = vmatpush2.bf16.msra.mxu0 %v3655_v58  ;;  %2278 = vmatpush2.bf16.msra.mxu1 %v3658_v59  ;;  %v3724_v58 = vld [vmem:[#allocation10 + $0x278] ss:$12 sps:$4 sm:$0xff]  }
 0x187   :  { %2238 = vmatprep.subr.bf16.mxu0 %v3663_v60  ;;  %2279 = vmatprep.subr.bf16.mxu1 %v3666_v61  ;;  %v3725_v59 = vld [vmem:[#allocation10 + $0x38] ss:$12 sps:$4 sm:$0xff]   ;;  %v3727_v61 = vld [vmem:[#allocation10 + $0xe0] ss:$12 sps:$4 sm:$0xff]  }
 0x188   :  { %v3726_v60 = vld [vmem:[#allocation10 + $0x1b8] ss:$12 sps:$4 sm:$0xff]  }
 0x18a   :  { %2239 = vmatpush2.bf16.msra.mxu0 %v3661_v62  ;;  %2280 = vmatpush2.bf16.msra.mxu1 %v3664_v63  ;;  %v3728_v62 = vld [vmem:[#allocation10 + $0x260] ss:$12 sps:$4 sm:$0xff]  }
 0x18b   :  { %2240 = vmatprep.subr.bf16.mxu0 %v3669_v1  ;;  %2281 = vmatprep.subr.bf16.mxu1 %v3672_v3  ;;  %v3729_v63 = vld [vmem:[#allocation10 + $0x20] ss:$12 sps:$4 sm:$0xff]   ;;  %v3731_v3 = vld [vmem:[#allocation10 + $0xc8] ss:$12 sps:$4 sm:$0xff]  }
 0x18c   :  { %v3730_v1 = vld [vmem:[#allocation10 + $0x1a0] ss:$12 sps:$4 sm:$0xff]  }
 0x18e   :  { %2241 = vmatpush2.bf16.msra.mxu0 %v3667_v4  ;;  %2282 = vmatpush2.bf16.msra.mxu1 %v3670_v11  ;;  %v3732_v4 = vld [vmem:[#allocation10 + $0x248] ss:$12 sps:$4 sm:$0xff]  }
 0x18f   :  { %2242 = vmatprep.subr.bf16.mxu0 %v3675_v13  ;;  %2283 = vmatprep.subr.bf16.mxu1 %v3678_v14  ;;  %v3733_v11 = vld [vmem:[#allocation10 + $0x8] ss:$12 sps:$4 sm:$0xff]   ;;  %v3735_v14 = vld [vmem:[#allocation11 + $0x78] sm:$0xff]  }
 0x190   :  { %v3734_v13 = vld [vmem:[#allocation10 + $0x188] ss:$12 sps:$4 sm:$0xff]  }
 0x192   :  { %2243 = vmatpush2.bf16.msra.mxu0 %v3673_v15  ;;  %2284 = vmatpush2.bf16.msra.mxu1 %v3676_v16  ;;  %v3736_v15 = vld [vmem:[#allocation11 + $0x38] sm:$0xff]   ;;  %v3737_v16 = vld [vmem:[#allocation11 + $0x70] sm:$0xff]  }
 0x193   :  { %2244 = vmatprep.subr.bf16.mxu0 %v3681_v17  ;;  %2285 = vmatprep.subr.bf16.mxu1 %v3684_v18  ;;  %v3751_v17 = vld [vmem:[#allocation11 + $0xb8] sm:$0xff]   ;;  %v3967_v18 = vmov 0.0  }
 0x196   :  { %2245 = vmatpush2.bf16.msra.mxu0 %v3679_v19  ;;  %2286 = vmatpush2.bf16.msra.mxu1 %v3682_v21  ;;  %v3738_v19 = vld [vmem:[#allocation11 + $0x30] sm:$0xff]  }
 0x197   :  { %2246 = vmatprep.subr.bf16.mxu0 %v3687_v22  ;;  %2287 = vmatprep.subr.bf16.mxu1 %v3690_v23  ;;  %v3752_v21 = vld [vmem:[#allocation11 + $0xb0] sm:$0xff]   ;;  %v3741_v22 = vld [vmem:[#allocation11 + $0x60] sm:$0xff]   ;;  %v3753_v23 = vld [vmem:[#allocation11 + $0xa8] sm:$0xff]  }
 0x19a   :  { %2247 = vmatpush2.bf16.msra.mxu0 %v3685_v25  ;;  %2288 = vmatpush2.bf16.msra.mxu1 %v3688_v27  ;;  %v3743_v25 = vld [vmem:[#allocation11 + $0x58] sm:$0xff]  }
 0x19b   :  { %2248 = vmatprep.subr.bf16.mxu0 %v3693_v28  ;;  %2289 = vmatprep.subr.bf16.mxu1 %v3696_v32  ;;  %v3744_v27 = vld [vmem:[#allocation11 + $0x18] sm:$0xff]   ;;  %v3745_v28 = vld [vmem:[#allocation11 + $0x50] sm:$0xff]  }
 0x19c   :  { %v3755_v32 = vld [vmem:[#allocation11 + $0x98] sm:$0xff]  }
 0x19e   :  { %2249 = vmatpush2.bf16.msra.mxu0 %v3691_v34  ;;  %2290 = vmatpush2.bf16.msra.mxu1 %v3694_v36  ;;  %v3747_v34 = vld [vmem:[#allocation11 + $0x48] sm:$0xff]  }
 0x19f   :  { %2250 = vmatprep.subr.bf16.mxu0 %v3699_v37  ;;  %2291 = vmatprep.subr.bf16.mxu1 %v3702_v35  ;;  %v3748_v36 = vld [vmem:[#allocation11 + $0x8] sm:$0xff]   ;;  %v3749_v37 = vld [vmem:[#allocation11 + $0x40] sm:$0xff]  }
 0x1a0   :  { %v3757_v35 = vld [vmem:[#allocation11 + $0x88] sm:$0xff]  }
 0x1a2   :  { %2251 = vmatpush2.bf16.msra.mxu0 %v3697_v8  ;;  %2292 = vmatpush2.bf16.msra.mxu1 %v3700_v39  ;;  %v3758_v8 = vld [vmem:[#allocation11 + $0x80] sm:$0xff]   ;;  %v866_v39 = vld [vmem:[%s4177_s4] sm:$0x7] }
 0x1a3   :  { %3316 = vmatprep.subr.bf16.mxu0 %v3703_v40  ;;  %3338 = vmatprep.subr.bf16.mxu1 %v3704_v5  ;;  %v871_v40 = vrot.slane %v866_v39, %v4076_v7  ;;  %v875_v5 = vrot.slane %v866_v39, %v4084_v10 }
 0x1a5   :  { %2253 = vmatmul.mubr.bf16.vlgmr.msra.gmra.mxu0 %v4124_v41  ;;  %2294 = vmatmul.mubr.bf16.vlgmr.msra.gmra.mxu1 %v4122_v0 }
 0x1a6   :  { %3317 = vmatpush3.bf16.msra.mxu0 %v3705_v2  ;;  %2334 = vmatprep.mubr.bf16.mxu0 %v4108_v29  ;;  %v3718_v29 = vld [vmem:[#allocation10 + $0x1e8] ss:$12 sps:$4 sm:$0xff]  }
 0x1a7   :  { %3339 = vmatpush3.bf16.msra.mxu1 %v3706_v42  ;;  %2374 = vmatprep.mubr.bf16.mxu1 %v4111_v30  ;;  %v3721_v30 = vld [vmem:[#allocation10 + $0x50] ss:$12 sps:$4 sm:$0xff]  }
 0x1a8   :  { %3318 = vmatprep.subr.bf16.mxu0 %v3707_v43  ;;  %3340 = vmatprep.subr.bf16.mxu1 %v3708_v44 }
 0x1aa   :  { %3319 = vmatpush3.bf16.msra.mxu0 %v3709_v45 }
 0x1ab   :  { %3341 = vmatpush3.bf16.msra.mxu1 %v3710_v46  ;;  %3320 = vmatprep.subr.bf16.mxu0 %v3711_v47 }
 0x1ac   :  { %3342 = vmatprep.subr.bf16.mxu1 %v3712_v48 }
 0x1ae   :  { %3321 = vmatpush3.bf16.msra.mxu0 %v3713_v49 }
 0x1af   :  { %3343 = vmatpush3.bf16.msra.mxu1 %v3714_v50  ;;  %3322 = vmatprep.subr.bf16.mxu0 %v3715_v51 }
 0x1b0   :  { %3344 = vmatprep.subr.bf16.mxu1 %v3716_v52 }
 0x1b2   :  { %3323 = vmatpush3.bf16.msra.mxu0 %v3717_v53 }
 0x1b3   :  { %3345 = vmatpush3.bf16.msra.mxu1 %v3718_v29  ;;  %3324 = vmatprep.subr.bf16.mxu0 %v3719_v54  ;;  %v3760_v29 = vld [vmem:[#allocation13 + $0x38] sm:$0xff]  }
 0x1b4   :  { %3346 = vmatprep.subr.bf16.mxu1 %v3720_v55  ;;  %v3761_v55 = vld [vmem:[#allocation13 + $0x70] sm:$0xff]  }
 0x1b6   :  { %3325 = vmatpush3.bf16.msra.mxu0 %v3721_v30  ;;  %v3762_v30 = vld [vmem:[#allocation13 + $0x30] sm:$0xff]  }
 0x1b7   :  { %3347 = vmatpush3.bf16.msra.mxu1 %v3722_v56  ;;  %3326 = vmatprep.subr.bf16.mxu0 %v3723_v57  ;;  %v3763_v56 = vld [vmem:[#allocation13 + $0x68] sm:$0xff]  }
 0x1b8   :  { %3348 = vmatprep.subr.bf16.mxu1 %v3724_v58  ;;  %v3764_v57 = vld [vmem:[#allocation13 + $0x28] sm:$0xff]   ;;  %v3765_v58 = vld [vmem:[#allocation13 + $0x60] sm:$0xff]  }
 0x1ba   :  { %3327 = vmatpush3.bf16.msra.mxu0 %v3725_v59  ;;  %v3766_v59 = vld [vmem:[#allocation13 + $0x20] sm:$0xff]  }
 0x1bb   :  { %3349 = vmatpush3.bf16.msra.mxu1 %v3726_v60  ;;  %3328 = vmatprep.subr.bf16.mxu0 %v3727_v61  ;;  %v3767_v60 = vld [vmem:[#allocation13 + $0x58] sm:$0xff]  }
 0x1bc   :  { %3350 = vmatprep.subr.bf16.mxu1 %v3728_v62  ;;  %v3768_v61 = vld [vmem:[#allocation13 + $0x18] sm:$0xff]   ;;  %v3769_v62 = vld [vmem:[#allocation13 + $0x50] sm:$0xff]  }
 0x1be   :  { %3329 = vmatpush3.bf16.msra.mxu0 %v3729_v63  ;;  %v3770_v63 = vld [vmem:[#allocation13 + $0x10] sm:$0xff]  }
 0x1bf   :  { %3351 = vmatpush3.bf16.msra.mxu1 %v3730_v1  ;;  %3330 = vmatprep.subr.bf16.mxu0 %v3731_v3  ;;  %v3771_v1 = vld [vmem:[#allocation13 + $0x48] sm:$0xff]  }
 0x1c0   :  { %3352 = vmatprep.subr.bf16.mxu1 %v3732_v4 }
 0x1c2   :  { %3331 = vmatpush3.bf16.msra.mxu0 %v3733_v11  ;;  %v879_v11 = vrot.slane %v866_v39, %v4081_v9 }
 0x1c3   :  { %3353 = vmatpush3.bf16.msra.mxu1 %v3734_v13  ;;  %3360 = vmatprep.subr.bf16.mxu0 %v3735_v14  ;;  %v3772_v13 = vld [vmem:[#allocation13 + $0x8] sm:$0xff]  }
 0x1c4   :  { %3422 = vmatprep.subr.bf16.mxu1 %v3967_v18 }
 0x1c5   :  { %2335 = vmatmul.mubr.bf16.vlgmr.msra.gmra.mxu0 %v4124_v41 }
 0x1c6   :  { %2375 = vmatmul.mubr.bf16.vlgmr.msra.gmra.mxu1 %v4122_v0  ;;  %3361 = vmatpush3.bf16.msra.mxu0 %v3736_v15  ;;  %v3773_v15 = vld [vmem:[#allocation13 + $0x40] sm:$0xff]  }
 0x1c7   :  { %3362 = vmatprep.subr.bf16.mxu0 %v3737_v16  ;;  %3423 = vmatpush3.bf16.msra.mxu1 %v3751_v17 }
 0x1c8   :  { %3424 = vmatprep.subr.bf16.mxu1 %v3967_v18  ;;  %3438 = vmatprep.mubr.msk.bf16.mxu1 %vm3968_vm0, %v3967_v18 }
 0x1ca   :  { %3363 = vmatpush3.bf16.msra.mxu0 %v3738_v19 }
 0x1cb   :  { %3364 = vmatprep.subr.bf16.mxu0 %v3739_v20  ;;  %3425 = vmatpush3.bf16.msra.mxu1 %v3752_v21 }
 0x1cc   :  { %3426 = vmatprep.subr.bf16.mxu1 %v3967_v18 }
 0x1ce   :  { %3365 = vmatpush3.bf16.msra.mxu0 %v3740_v12 }
 0x1cf   :  { %3366 = vmatprep.subr.bf16.mxu0 %v3741_v22  ;;  %3427 = vmatpush3.bf16.msra.mxu1 %v3753_v23  ;;  %v3774_v22 = vld [vmem:[#allocation13] sm:$0xff]  }
 0x1d0   :  { %3428 = vmatprep.subr.bf16.mxu1 %v3967_v18 }
 0x1d2   :  { %3367 = vmatpush3.bf16.msra.mxu0 %v3742_v24 }
 0x1d3   :  { %3368 = vmatprep.subr.bf16.mxu0 %v3743_v25  ;;  %3429 = vmatpush3.bf16.msra.mxu1 %v3754_v26 }
 0x1d4   :  { %3430 = vmatprep.subr.bf16.mxu1 %v3967_v18 }
 0x1d6   :  { %3369 = vmatpush3.bf16.msra.mxu0 %v3744_v27  ;;  %v3775_v27 = vld [vmem:[#allocation13 + $0xb8] sm:$0xff]  }
 0x1d7   :  { %3370 = vmatprep.subr.bf16.mxu0 %v3745_v28  ;;  %3431 = vmatpush3.bf16.msra.mxu1 %v3755_v32  ;;  %v3776_v32 = vld [vmem:[#allocation13 + $0xb0] sm:$0xff]  }
 0x1d8   :  { %3432 = vmatprep.subr.bf16.mxu1 %v3967_v18 }
 0x1da   :  { %3371 = vmatpush3.bf16.msra.mxu0 %v3746_v33  ;;  %v3777_v33 = vld [vmem:[#allocation13 + $0xa8] sm:$0xff]  }
 0x1db   :  { %3372 = vmatprep.subr.bf16.mxu0 %v3747_v34  ;;  %3433 = vmatpush3.bf16.msra.mxu1 %v3756_v6  ;;  %v3778_v34 = vld [vmem:[#allocation13 + $0xa0] sm:$0xff]   ;;  %v3779_v6 = vld [vmem:[#allocation13 + $0x98] sm:$0xff]  }
 0x1dc   :  { %3434 = vmatprep.subr.bf16.mxu1 %v3967_v18 }
 0x1de   :  { %3373 = vmatpush3.bf16.msra.mxu0 %v3748_v36  ;;  %v3780_v36 = vld [vmem:[#allocation13 + $0x90] sm:$0xff]  }
 0x1df   :  { %3374 = vmatprep.subr.bf16.mxu0 %v3749_v37  ;;  %3435 = vmatpush3.bf16.msra.mxu1 %v3757_v35  ;;  %v3781_v37 = vld [vmem:[#allocation13 + $0x88] sm:$0xff]   ;;  %v3782_v35 = vld [vmem:[#allocation13 + $0x80] sm:$0xff]  }
 0x1e0   :  { %3436 = vmatprep.subr.bf16.mxu1 %v3967_v18 }
 0x1e2   :  { %3375 = vmatpush3.bf16.msra.mxu0 %v3750_v38  ;;  %v1691_v38 = vld [vmem:[%s4179_s6] sm:$0x7] }
 0x1e3   :  { %3437 = vmatpush3.bf16.msra.mxu1 %v3758_v8  ;;  %3391 = vmatprep.subr.bf16.mxu0 %v3759_v31  ;;  %v1696_v8 = vrot.slane %v1691_v38, %v4076_v7  ;;  %v1700_v31 = vrot.slane %v1691_v38, %v4084_v10 }
 0x1e4   :  { %3442 = vmatprep.subr.bf16.mxu1 %v3967_v18 }
 0x205   :  { %v1429_v0 = vpop.f32.mrf.mxu0  ;;  %v1470_v41 = vpop.f32.mrf.mxu1 }
 0x206   :  { %v1430_v2 = vadd.f32 %v1429_v0, %v871_v40 }
 0x207   :  { %v1431_v42 = vpop.f32.mrf.mxu0  ;;  %v1472_v45 = vpop.f32.mrf.mxu1 }
 0x208   :  { %v1471_v43 = vadd.f32 %v1470_v41, %v1430_v2  ;;  %v1432_v44 = vadd.f32 %v1431_v42, %v875_v5 }
 0x209   :  { %v1433_v46 = vpop.f32.mrf.mxu0  ;;  %v1474_v48 = vpop.f32.mrf.mxu1 }
 0x20a   :  { %v1473_v47 = vadd.f32 %v1472_v45, %v1432_v44  ;;  %v1557_v49 = vmax.f32 %v1471_v43, 0.0 }
 0x20b   :  { %v1434_v50 = vpop.f32.mrf.mxu0  ;;  %v1475_v52 = vpop.f32.mrf.mxu1 }
 0x20c   :  { %v1558_v51 = vmax.f32 %v1473_v47, 0.0  ;;  %v1560_v54 = vpack.c.bf16 %v1557_v49, %v1557_v49 }
 0x20e   :  { %v1561_v53 = vpack.c.bf16 %v1558_v51, %v1558_v51  ;;  %v1704_v51 = vrot.slane %v1691_v38, %v4081_v9  ;;  %v3222_v9 = vld [vmem:[%s4181_s8] ss:$0 sm:$0xff]  ;;  %s3923_s8 = scalar_lea.vmem %s2955_s18, 256 }
 0x20f   :  { %p3924_p7 = scmp.ne.s32.totalorder %s2955_s18, %s3923_s8  ;;  %p3929_p9 = scmp.lt.s32.totalorder %s3923_s8, %s3923_s8 }
 0x210   :  { %2619 = vmatprep.mubr.bf16.mxu0 %v1561_v53 }
 0x211   :  { %2620 = vmatmul.mubr.bf16.vlgmr.msra.gmra.mxu0 %v1560_v54  ;;  %p3930_p10 = por %p3929_p9, %p3928_p8 }
 0x212   :  { %3392 = vmatpush3.bf16.msra.mxu0 %v3760_v29 }
 0x213   :  { %3393 = vmatprep.subr.bf16.mxu0 %v3761_v55  ;;  %p3931_p11 = pnand %p3930_p10, %p3924_p7 }
 0x216   :  { %3394 = vmatpush3.bf16.msra.mxu0 %v3762_v30 }
 0x217   :  { %3395 = vmatprep.subr.bf16.mxu0 %v3763_v56 }
 0x21a   :  { %3396 = vmatpush3.bf16.msra.mxu0 %v3764_v57 }
 0x21b   :  { %3397 = vmatprep.subr.bf16.mxu0 %v3765_v58 }
 0x21e   :  { %3398 = vmatpush3.bf16.msra.mxu0 %v3766_v59 }
 0x21f   :  { %3399 = vmatprep.subr.bf16.mxu0 %v3767_v60 }
 0x222   :  { %3400 = vmatpush3.bf16.msra.mxu0 %v3768_v61 }
 0x223   :  { %3401 = vmatprep.subr.bf16.mxu0 %v3769_v62 }
 0x225   :  { %v3288_v3 = vpop.f32.mrf.mxu0  ;;  %v3310_v4 = vpop.f32.mrf.mxu1 }
 0x226   :  { %3402 = vmatpush3.bf16.msra.mxu0 %v3770_v63 }
 0x227   :  { %v3289_v14 = vpop.f32.mrf.mxu0  ;;  %3403 = vmatprep.subr.bf16.mxu0 %v3771_v1  ;;  %v3311_v17 = vpop.f32.mrf.mxu1 }
 0x228   :  { %v3290_v16 = vadd.f32 %v3289_v14, %v3288_v3  ;;  %v3312_v21 = vadd.f32 %v3311_v17, %v3310_v4 }
 0x229   :  { %v3291_v19 = vpop.f32.mrf.mxu0  ;;  %v3313_v12 = vpop.f32.mrf.mxu1 }
 0x22a   :  { %v1512_v20 = vadd.f32 %v3290_v16, %v879_v11  ;;  %3404 = vmatpush3.bf16.msra.mxu0 %v3772_v13 }
 0x22b   :  { %v3292_v23 = vpop.f32.mrf.mxu0  ;;  %3405 = vmatprep.subr.bf16.mxu0 %v3773_v15  ;;  %v3314_v25 = vpop.f32.mrf.mxu1 }
 0x22c   :  { %v1552_v24 = vadd.f32 %v3312_v21, %v1512_v20  ;;  %v3247_v23 = vld [vmem:[%s4183_s10] ss:$0 sm:$0xff] }
 0x22e   :  { %v1559_v26 = vmax.f32 %v1552_v24, 0.0  ;;  %3406 = vmatpush3.bf16.msra.mxu0 %v3774_v22 }
 0x230   :  { %v1562_v28 = vpack.c.bf16 %v1559_v26, %v1559_v26 }
 0x232   :  { %3439 = vmatmul.mubr.bf16.vlgmr.msra.gmra.mxu1 %v1562_v28 }
 0x233   :  { %3443 = vmatpush3.bf16.msra.mxu1 %v3775_v27  ;;  %3458 = vmatprep.mubr.msk.bf16.mxu1 %vm3968_vm0, %v3967_v18 }
 0x234   :  { %3444 = vmatprep.subr.bf16.mxu1 %v3967_v18 }
 0x237   :  { %3445 = vmatpush3.bf16.msra.mxu1 %v3776_v32 }
 0x238   :  { %3446 = vmatprep.subr.bf16.mxu1 %v3967_v18 }
 0x23b   :  { %3447 = vmatpush3.bf16.msra.mxu1 %v3777_v33 }
 0x23c   :  { %3448 = vmatprep.subr.bf16.mxu1 %v3967_v18 }
 0x23f   :  { %3449 = vmatpush3.bf16.msra.mxu1 %v3778_v34 }
 0x240   :  { %3450 = vmatprep.subr.bf16.mxu1 %v3967_v18 }
 0x243   :  { %3451 = vmatpush3.bf16.msra.mxu1 %v3779_v6 }
 0x244   :  { %3452 = vmatprep.subr.bf16.mxu1 %v3967_v18 }
 0x247   :  { %3453 = vmatpush3.bf16.msra.mxu1 %v3780_v36 }
 0x248   :  { %3454 = vmatprep.subr.bf16.mxu1 %v3967_v18 }
 0x24b   :  { %3455 = vmatpush3.bf16.msra.mxu1 %v3781_v37 }
 0x24c   :  { %3456 = vmatprep.subr.bf16.mxu1 %v3967_v18 }
 0x24f   :  { %3457 = vmatpush3.bf16.msra.mxu1 %v3782_v35 }
 0x265   :  { %v2254_v39 = vpop.f32.mrf.mxu0  ;;  %v2295_v5 = vpop.f32.mrf.mxu1 }
 0x266   :  { %v2255_v40 = vadd.f32 %v2254_v39, %v1696_v8 }
 0x267   :  { %v2256_v0 = vpop.f32.mrf.mxu0  ;;  %v2297_v42 = vpop.f32.mrf.mxu1 }
 0x268   :  { %v2296_v2 = vadd.f32 %v2295_v5, %v2255_v40  ;;  %v2257_v41 = vadd.f32 %v2256_v0, %v1700_v31 }
 0x269   :  { %v2258_v43 = vpop.f32.mrf.mxu0  ;;  %v2299_v45 = vpop.f32.mrf.mxu1 }
 0x26a   :  { %v2298_v44 = vadd.f32 %v2297_v42, %v2257_v41  ;;  %v2382_v18 = vmax.f32 %v2296_v2, 0.0 }
 0x26b   :  { %v2259_v46 = vpop.f32.mrf.mxu0  ;;  %v2300_v48 = vpop.f32.mrf.mxu1 }
 0x26c   :  { %v2383_v47 = vmax.f32 %v2298_v44, 0.0  ;;  %v2385_v50 = vpack.c.bf16 %v2382_v18, %v2382_v18 }
 0x26e   :  { %v2386_v49 = vpack.c.bf16 %v2383_v47, %v2383_v47 }
 0x270   :  { %2898 = vmatprep.mubr.bf16.mxu0 %v2386_v49 }
 0x271   :  { %2899 = vmatmul.mubr.bf16.vlgmr.msra.gmra.mxu0 %v2385_v50 }
 0x285   :  { %v3332_v7 = vpop.f32.mrf.mxu0 }
 0x286   :  { %v3354_v10 = vpop.f32.mrf.mxu1 }
 0x287   :  { %v3333_v52 = vpop.f32.mrf.mxu0 }
 0x288   :  { %v3334_v53 = vadd.f32 %v3333_v52, %v3332_v7  ;;  %v3355_v29 = vpop.f32.mrf.mxu1 }
 0x289   :  { %v3335_v54 = vpop.f32.mrf.mxu0  ;;  %v3356_v30 = vadd.f32 %v3355_v29, %v3354_v10 }
 0x28a   :  { %v2337_v55 = vadd.f32 %v3334_v53, %v1704_v51  ;;  %v3357_v56 = vpop.f32.mrf.mxu1 }
 0x28b   :  { %v3336_v57 = vpop.f32.mrf.mxu0 }
 0x28c   :  { %v2377_v58 = vadd.f32 %v3356_v30, %v2337_v55  ;;  %v3358_v59 = vpop.f32.mrf.mxu1 }
 0x28e   :  { %v2384_v60 = vmax.f32 %v2377_v58, 0.0 }
 0x290   :  { %v2387_v61 = vpack.c.bf16 %v2384_v60, %v2384_v60 }
 0x292   :  { %3459 = vmatmul.mubr.bf16.vlgmr.msra.gmra.mxu1 %v2387_v61 }
 0x2d1   :  { %v3376_v62 = vpop.f32.mrf.mxu0 }
 0x2d3   :  { %v3377_v63 = vpop.f32.mrf.mxu0 }
 0x2d4   :  { %v3378_v4 = vadd.f32 %v3377_v63, %v3376_v62 }
 0x2d5   :  { %v3379_v1 = vpop.f32.mrf.mxu0 }
 0x2d6   :  { %v2622_v11 = vadd.f32 %v3378_v4, %v3222_v9 }
 0x2d7   :  { %v3380_v3 = vpop.f32.mrf.mxu0 }
 0x2f2   :  { %v2661_v13 = vpop.f32.mrf.mxu1 }
 0x2f3   :  { %v2662_v14 = vadd.f32 %v2661_v13, %v2622_v11 }
 0x2f4   :  { %v3440_v15 = vpop.f32.mrf.mxu1 }
 0x2f5   :  { %2946 = vst [vmem:[#allocation14] sm:$0xff] %v2662_v14 }
 0x2f6   :  { %v2664_v16 = vpop.f32.mrf.mxu1 }
 0x2f8   :  { %v3441_v17 = vpop.f32.mrf.mxu1 }
 0x331   :  { %v3407_v19 = vpop.f32.mrf.mxu0 }
 0x333   :  { %v3408_v20 = vpop.f32.mrf.mxu0 }
 0x334   :  { %v3409_v22 = vadd.f32 %v3408_v20, %v3407_v19 }
 0x335   :  { %v3410_v21 = vpop.f32.mrf.mxu0 }
 0x336   :  { %v2901_v24 = vadd.f32 %v3409_v22, %v3247_v23 }
 0x337   :  { %v3411_v12 = vpop.f32.mrf.mxu0 }
 0x352   :  { %v2940_v25 = vpop.f32.mrf.mxu1 }
 0x353   :  { %v2941_v26 = vadd.f32 %v2940_v25, %v2901_v24 }
 0x354   :  { %v3460_v27 = vpop.f32.mrf.mxu1 }
 0x355   :  { %2947 = vst [vmem:[#allocation14 + $0x8] sm:$0xff] %v2941_v26 }
 0x356   :  { %v2943_v28 = vpop.f32.mrf.mxu1 }
 0x357   :  { %3934 = shalt.err (!%p3931_p11)
}
 0x358   :  { %2957 = dma.vmem_to_hbm [thread:$0]  %s2955_s18, 256, %s4184_s11, [#allocation4]   ;;  %v3461_v32 = vpop.f32.mrf.mxu1 }
 0x359   :  { %3951 = dma.done.wait [#allocation4], 256  }
 0x35a   :  { %3952 = vsyncadd [#allocation4], 4294967040 }
 0x35b   :  { %2961 = vsyncpa [#allocation3], 1 }
 0x35c   :  { %2962 = vsyncpa [#allocation6], 1 }
 0x35d   :  { %2963 = vsyncpa [#allocation9], 1 }
 0x35e   :  { %2964 = vsyncpa [#allocation12], 1 }
 0x35f   :  { %2965 = vsyncpa [#allocation4], 1 }

</bundles_post_ra>
